<compile_context>
chip_gen: v5e
topology: v5e:2x2
jax: 0.10.0
libtpu: 0.0.40
codegen_flags: <defaults>
</compile_context>

<pallas_src>
import jax
import jax.numpy as jnp
import numpy as np
from jax.experimental import pallas as pl
from jax.experimental.pallas import tpu as pltpu


# ----------------------------------------------------------------------------
# One-time parameter packing (host-side, outside the per-call path)
# ----------------------------------------------------------------------------
_SLAB_LANES = 128  # lane width of the parameter slab (>= every output dim)


def pack_sentence_lstm_params(p):
    """Pack all weights/biases into one (R, 128) f32 slab + static layout.

    Fusions done here (once):
      * w_full is stored transposed as a row vector (VPU mul + lane reduce).
      * b_ih + b_hh, b_th + b_tc, b_sp + b_sc fused into single biases.
      * topic / final-stop weights zero-padded to 128 output lanes so the
        in-kernel stores are lane-dense and unmasked.
    """
    C = _SLAB_LANES
    layout = {}
    chunks = []
    cur = 0

    def add(name, arr, pad_cols_to=None):
        nonlocal cur
        a = np.asarray(arr, np.float32)
        if a.ndim == 1:
            a = a[None, :]
        r, c = a.shape
        r_pad = -(-r // 8) * 8                 # 8-sublane aligned row offsets
        block = np.zeros((r_pad, C), np.float32)
        block[:r, :c] = a
        layout[name] = (cur, r, pad_cols_to if pad_cols_to is not None else c)
        chunks.append(block)
        cur += r_pad

    add("w_enc", p["w_enc"]); add("b_enc", p["b_enc"])
    add("w_dec", p["w_dec"]); add("b_dec", p["b_dec"])
    add("w_full_row", np.asarray(p["w_full"], np.float32).T)   # (1, A)
    add("b_full", p["b_full"])                                  # (1, 1)
    add("w_ctx", p["w_ctx"]); add("b_ctx", p["b_ctx"])
    add("w_ih", p["w_ih"]); add("w_hh", p["w_hh"])
    add("b_gates", np.asarray(p["b_ih"]) + np.asarray(p["b_hh"]))
    # topic head: lane-padded to 128 (extra lanes -> tanh(0) = 0)
    add("w_th", p["w_th"], pad_cols_to=C)
    add("w_tc", p["w_tc"], pad_cols_to=C)
    add("b_topic", np.asarray(p["b_th"]) + np.asarray(p["b_tc"]), pad_cols_to=C)
    # stop head
    add("w_sp", p["w_sp"]); add("w_sc", p["w_sc"])
    add("b_stop", np.asarray(p["b_sp"]) + np.asarray(p["b_sc"]))
    # final stop layer: lane-padded to 128 (extra lanes = 0)
    add("w_fin", p["w_fin"], pad_cols_to=C)
    add("b_fin", p["b_fin"], pad_cols_to=C)

    slab = jnp.asarray(np.concatenate(chunks, axis=0))
    return slab, layout


# ----------------------------------------------------------------------------
# Kernel (built once per shape config; layout offsets are static)
# ----------------------------------------------------------------------------
def make_sentence_lstm_kernel(layout, *, B, N, Dv, H, A, SI, S):
    f32 = jnp.float32

    def _ld(ref, name):
        off, r, c = layout[name]
        return ref[pl.ds(off, r), pl.ds(0, c)]

    def kernel(vis_ref, slab_ref, topics_ref, ps_ref):
        vis_flat = vis_ref[...]                                   # (B*N, Dv)

        # ---- loop-invariant projections, computed exactly once ----
        enc_att = (jnp.dot(vis_flat, _ld(slab_ref, "w_enc"),
                           preferred_element_type=f32)
                   + _ld(slab_ref, "b_enc")).reshape(B, N, A)     # (B, N, A)
        # context layer hoisted through the linear attention:
        #   context_t = sum_n att_t[n] * (vis[n] @ w_ctx) + b_ctx
        vis_ctx = jnp.dot(vis_flat, _ld(slab_ref, "w_ctx"),
                          preferred_element_type=f32).reshape(B, N, SI)

        # ---- only the small, critical-path attention params live in vregs ----
        w_dec = _ld(slab_ref, "w_dec")
        b_dec = _ld(slab_ref, "b_dec")
        w_full_row = _ld(slab_ref, "w_full_row")                  # (1, A)
        b_full = _ld(slab_ref, "b_full")                          # (1, 1)
        b_ctx = _ld(slab_ref, "b_ctx")                            # (1, SI)

        h = jnp.zeros((B, H), f32)
        c = jnp.zeros((B, H), f32)

        # Fully-unrolled recurrence (S small, static); h/c carried in vregs.
        for t in range(S):
            # ---------------- VisAttention ----------------
            dec_att = jnp.dot(h, w_dec, preferred_element_type=f32) + b_dec
            join = jnp.tanh(enc_att + dec_att[:, None, :])        # (B, N, A)
            # full_att (A -> 1) as VPU multiply + lane reduction
            logits = jnp.sum(join * w_full_row, axis=-1) + b_full  # (B, N)
            m = jnp.max(logits, axis=1, keepdims=True)
            e = jnp.exp(logits - m)
            att = e * pl.reciprocal(jnp.sum(e, axis=1, keepdims=True),
                                    approx=False)                 # (B, N)

            # ---------------- context (attention-weighted, matmul hoisted) ----
            context = jnp.sum(att[:, :, None] * vis_ctx, axis=1) + b_ctx  # (B, SI)

            # ---------------- LSTMCell: split gate dots (no lane concat) ------
            gates = (jnp.dot(context, _ld(slab_ref, "w_ih"),
                             preferred_element_type=f32)
                     + jnp.dot(h, _ld(slab_ref, "w_hh"),
                               preferred_element_type=f32)
                     + _ld(slab_ref, "b_gates"))                  # (B, 4H)
            i_g = jax.nn.sigmoid(gates[:, 0 * H:1 * H])
            f_g = jax.nn.sigmoid(gates[:, 1 * H:2 * H])
            g_g = jnp.tanh(gates[:, 2 * H:3 * H])
            o_g = jax.nn.sigmoid(gates[:, 3 * H:4 * H])
            c_new = f_g * c + i_g * g_g
            h_new = o_g * jnp.tanh(c_new)

            # ---------------- topic head (lane-padded, off critical path) -----
            topic = jnp.tanh(jnp.dot(h_new, _ld(slab_ref, "w_th"),
                                     preferred_element_type=f32)
                             + jnp.dot(context, _ld(slab_ref, "w_tc"),
                                       preferred_element_type=f32)
                             + _ld(slab_ref, "b_topic"))          # (B, 128)

            # ---------------- stop head (lane-padded) -------------------------
            p_mid = jnp.tanh(jnp.dot(h, _ld(slab_ref, "w_sp"),
                                     preferred_element_type=f32)
                             + jnp.dot(h_new, _ld(slab_ref, "w_sc"),
                                       preferred_element_type=f32)
                             + _ld(slab_ref, "b_stop"))           # (B, Istop)
            p = (jnp.dot(p_mid, _ld(slab_ref, "w_fin"),
                         preferred_element_type=f32)
                 + _ld(slab_ref, "b_fin"))                        # (B, 128)

            # direct (B, S, feat) stores -> no wrapper transposes
            topics_ref[:, t, :] = topic
            ps_ref[:, t, :] = p
            h, c = h_new, c_new

    return kernel


# ----------------------------------------------------------------------------
# Wrapper (per-call path: reshape + one pallas_call + two slices)
# ----------------------------------------------------------------------------
def sentence_lstm_forward(vis_enc_output, captions, packed,
                          sent_hidden_dim, word_input_dim,
                          att_dim, sent_input_dim):
    slab, layout = packed
    B = vis_enc_output.shape[0]
    Dv = vis_enc_output.shape[-1]
    vis_flat = vis_enc_output.reshape(-1, Dv).astype(jnp.float32)   # (B*N, Dv)
    N = vis_flat.shape[0] // B
    S = captions.shape[1]
    W = word_input_dim
    R, C = slab.shape
    W_pad = C
    F_pad = C

    kernel = make_sentence_lstm_kernel(
        layout, B=B, N=N, Dv=Dv, H=sent_hidden_dim, A=att_dim,
        SI=sent_input_dim, S=S)

    topics_p, ps_p = pl.pallas_call(
        kernel,
        grid=(1,),                      # recurrence fully unrolled inside the kernel
        in_specs=[pl.BlockSpec((B * N, Dv), lambda i: (0, 0)),
                  pl.BlockSpec((R, C), lambda i: (0, 0))],
        out_specs=(pl.BlockSpec((B, S, W_pad), lambda i: (0, 0, 0)),
                   pl.BlockSpec((B, S, F_pad), lambda i: (0, 0, 0))),
        out_shape=(jax.ShapeDtypeStruct((B, S, W_pad), jnp.float32),
                   jax.ShapeDtypeStruct((B, S, F_pad), jnp.float32)),
        compiler_params=pltpu.CompilerParams(
            dimension_semantics=("arbitrary",)),
    )(vis_flat, slab)

    # drop lane padding (no transposes needed)
    return topics_p[:, :, :W], ps_p[:, :, :2]


# ----------------------------------------------------------------------------
# Parameters
# ----------------------------------------------------------------------------
def init_params(key, vis_embed_dim, sent_hidden_dim, att_dim,
                sent_input_dim, word_input_dim, int_stop_dim):
    """Deterministic synthetic parameters. Weights stored as (in_dim, out_dim)."""
    def lin(k, din, dout, scale=0.05):
        kw, kb = jax.random.split(k)
        w = jax.random.normal(kw, (din, dout), jnp.float32) * scale
        b = jax.random.normal(kb, (1, dout), jnp.float32) * scale
        return w, b

    keys = jax.random.split(key, 11)
    p = {}
    p["w_enc"], p["b_enc"] = lin(keys[0], vis_embed_dim, att_dim)
    p["w_dec"], p["b_dec"] = lin(keys[1], sent_hidden_dim, att_dim)
    p["w_full"], p["b_full"] = lin(keys[2], att_dim, 1)
    p["w_ctx"], p["b_ctx"] = lin(keys[3], vis_embed_dim, sent_input_dim)
    p["w_ih"], p["b_ih"] = lin(keys[4], sent_input_dim, 4 * sent_hidden_dim)
    p["w_hh"], p["b_hh"] = lin(keys[5], sent_hidden_dim, 4 * sent_hidden_dim)
    p["w_th"], p["b_th"] = lin(keys[6], sent_hidden_dim, word_input_dim)
    p["w_tc"], p["b_tc"] = lin(keys[7], sent_input_dim, word_input_dim)
    p["w_sp"], p["b_sp"] = lin(keys[8], sent_hidden_dim, int_stop_dim)
    p["w_sc"], p["b_sc"] = lin(keys[9], sent_hidden_dim, int_stop_dim)
    p["w_fin"], p["b_fin"] = lin(keys[10], int_stop_dim, 2)
    return p


# ----------------------------------------------------------------------------
# Pure-JAX reference (mirrors the PyTorch forward)
# ----------------------------------------------------------------------------
def sentence_lstm_reference(vis_enc_output, captions, p,
                            sent_hidden_dim, word_input_dim):
    B = vis_enc_output.shape[0]
    Dv = vis_enc_output.shape[-1]
    vis = vis_enc_output.reshape(B, -1, Dv).astype(jnp.float32)
    S = captions.shape[1]
    H = sent_hidden_dim

    h = jnp.zeros((B, H), jnp.float32)
    c = jnp.zeros((B, H), jnp.float32)
    topics, ps = [], []
    for _ in range(S):
        enc = vis @ p["w_enc"] + p["b_enc"]
        dec = h @ p["w_dec"] + p["b_dec"]
        join = jnp.tanh(enc + dec[:, None, :])
        logits = (join @ p["w_full"] + p["b_full"])[..., 0]
        att = jax.nn.softmax(logits, axis=1)
        att_out = jnp.sum(att[:, :, None] * vis, axis=1)
        context = att_out @ p["w_ctx"] + p["b_ctx"]
        h_prev = h
        gates = context @ p["w_ih"] + p["b_ih"] + h @ p["w_hh"] + p["b_hh"]
        i_g = jax.nn.sigmoid(gates[:, 0 * H:1 * H])
        f_g = jax.nn.sigmoid(gates[:, 1 * H:2 * H])
        g_g = jnp.tanh(gates[:, 2 * H:3 * H])
        o_g = jax.nn.sigmoid(gates[:, 3 * H:4 * H])
        c = f_g * c + i_g * g_g
        h = o_g * jnp.tanh(c)
        topic = jnp.tanh(h @ p["w_th"] + p["b_th"] + context @ p["w_tc"] + p["b_tc"])
        pr = jnp.tanh(h_prev @ p["w_sp"] + p["b_sp"] + h @ p["w_sc"] + p["b_sc"])
        pr = pr @ p["w_fin"] + p["b_fin"]
        topics.append(topic)
        ps.append(pr)
    return jnp.stack(topics, axis=1), jnp.stack(ps, axis=1)


# ----------------------------------------------------------------------------
# Main
# ----------------------------------------------------------------------------
if __name__ == "__main__":
    B = 2
    enc_image_size = 4           # -> N = 16 spatial locations
    vis_embed_dim = 32
    sent_hidden_dim = 32
    att_dim = 32
    sent_input_dim = 32
    word_input_dim = 32
    int_stop_dim = 16
    max_no_of_sent = 4
    max_sent_len = 6

    key = jax.random.PRNGKey(0)
    k_vis, k_cap, k_par = jax.random.split(key, 3)

    vis_enc_output = jax.random.normal(
        k_vis, (B, enc_image_size, enc_image_size, vis_embed_dim), jnp.float32)
    captions = jax.random.randint(
        k_cap, (B, max_no_of_sent, max_sent_len), 0, 100, jnp.int32)

    params = init_params(k_par, vis_embed_dim, sent_hidden_dim, att_dim,
                         sent_input_dim, word_input_dim, int_stop_dim)

    # one-time parameter packing (outside the per-call path)
    packed = pack_sentence_lstm_params(params)

    topics, ps = sentence_lstm_forward(
        vis_enc_output, captions, packed,
        sent_hidden_dim, word_input_dim, att_dim, sent_input_dim)
    topics, ps = jax.block_until_ready((topics, ps))

    topics_ref, ps_ref = sentence_lstm_reference(
        vis_enc_output, captions, params, sent_hidden_dim, word_input_dim)

    np.testing.assert_allclose(np.asarray(topics), np.asarray(topics_ref),
                               rtol=1e-5, atol=1e-5)
    np.testing.assert_allclose(np.asarray(ps), np.asarray(ps_ref),
                               rtol=1e-5, atol=1e-5)

    assert topics.shape == (B, max_no_of_sent, word_input_dim)
    assert ps.shape == (B, max_no_of_sent, 2)
    print("KERNEL_OK")
</pallas_src>

<mosaic_0001>
module attributes {stable_mosaic.version = 11 : i64} {
  func.func @kernel(%arg0: i32, %arg1: memref<32x32xf32, #tpu.memory_space<vmem>>, %arg2: memref<376x128xf32, #tpu.memory_space<vmem>>, %arg3: memref<2x4x128xf32, #tpu.memory_space<vmem>>, %arg4: memref<2x4x128xf32, #tpu.memory_space<vmem>>) attributes {dimension_semantics = [#tpu.dimension_semantics<arbitrary>], iteration_bounds = array<i64: 1>, scalar_prefetch = 0 : i64, scratch_operands = 0 : i64, tpu.core_type = #tpu.core_type<tc>, window_params = [{pipeline_mode = #tpu.pipeline_mode<synchronous>, transform_indices = @transform_0, window_bounds = array<i64: 32, 32>}, {pipeline_mode = #tpu.pipeline_mode<synchronous>, transform_indices = @transform_1, window_bounds = array<i64: 376, 128>}, {pipeline_mode = #tpu.pipeline_mode<synchronous>, transform_indices = @transform_2, window_bounds = array<i64: 2, 4, 128>}, {pipeline_mode = #tpu.pipeline_mode<synchronous>, transform_indices = @transform_3, window_bounds = array<i64: 2, 4, 128>}]} {
    %c0 = arith.constant 0 : index
    %c0_0 = arith.constant 0 : index
    %0 = vector.load %arg1[%c0, %c0_0] : memref<32x32xf32, #tpu.memory_space<vmem>>, vector<32x32xf32>
    %c0_1 = arith.constant 0 : index
    %c0_2 = arith.constant 0 : index
    %1 = vector.load %arg2[%c0_1, %c0_2] : memref<376x128xf32, #tpu.memory_space<vmem>>, vector<32x32xf32>
    %cst = arith.constant dense<0.000000e+00> : vector<32x32xf32>
    %2 = tpu.matmul %0, %1, %cst {dimension_numbers = #tpu.dot_dimension_numbers<[1], [0], [0], [1], [0, 0, 1, 1], [], []>} : vector<32x32xf32>, vector<32x32xf32>, vector<32x32xf32> -> vector<32x32xf32>
    %c32 = arith.constant 32 : index
    %c0_3 = arith.constant 0 : index
    %3 = vector.load %arg2[%c32, %c0_3] : memref<376x128xf32, #tpu.memory_space<vmem>>, vector<1x32xf32>
    %4 = vector.broadcast %3 : vector<1x32xf32> to vector<32x32xf32>
    %5 = arith.addf %2, %4 : vector<32x32xf32>
    %6 = vector.shape_cast %5 : vector<32x32xf32> to vector<2x16x32xf32>
    %c96 = arith.constant 96 : index
    %c0_4 = arith.constant 0 : index
    %7 = vector.load %arg2[%c96, %c0_4] : memref<376x128xf32, #tpu.memory_space<vmem>>, vector<32x32xf32>
    %cst_5 = arith.constant dense<0.000000e+00> : vector<32x32xf32>
    %8 = tpu.matmul %0, %7, %cst_5 {dimension_numbers = #tpu.dot_dimension_numbers<[1], [0], [0], [1], [0, 0, 1, 1], [], []>} : vector<32x32xf32>, vector<32x32xf32>, vector<32x32xf32> -> vector<32x32xf32>
    %9 = vector.shape_cast %8 : vector<32x32xf32> to vector<2x16x32xf32>
    %c40 = arith.constant 40 : index
    %c0_6 = arith.constant 0 : index
    %10 = vector.load %arg2[%c40, %c0_6] : memref<376x128xf32, #tpu.memory_space<vmem>>, vector<32x32xf32>
    %c72 = arith.constant 72 : index
    %c0_7 = arith.constant 0 : index
    %11 = vector.load %arg2[%c72, %c0_7] : memref<376x128xf32, #tpu.memory_space<vmem>>, vector<1x32xf32>
    %c80 = arith.constant 80 : index
    %c0_8 = arith.constant 0 : index
    %12 = vector.load %arg2[%c80, %c0_8] : memref<376x128xf32, #tpu.memory_space<vmem>>, vector<1x32xf32>
    %c88 = arith.constant 88 : index
    %c0_9 = arith.constant 0 : index
    %13 = vector.load %arg2[%c88, %c0_9] : memref<376x128xf32, #tpu.memory_space<vmem>>, vector<1x1xf32>
    %c128 = arith.constant 128 : index
    %c0_10 = arith.constant 0 : index
    %14 = vector.load %arg2[%c128, %c0_10] : memref<376x128xf32, #tpu.memory_space<vmem>>, vector<1x32xf32>
    %cst_11 = arith.constant 0.000000e+00 : f32
    %15 = vector.broadcast %cst_11 : f32 to vector<2x32xf32>
    %cst_12 = arith.constant 0.000000e+00 : f32
    %16 = vector.broadcast %cst_12 : f32 to vector<2x32xf32>
    %cst_13 = arith.constant dense<0.000000e+00> : vector<2x32xf32>
    %17 = tpu.matmul %15, %10, %cst_13 {dimension_numbers = #tpu.dot_dimension_numbers<[1], [0], [0], [1], [0, 0, 1, 1], [], []>} : vector<2x32xf32>, vector<32x32xf32>, vector<2x32xf32> -> vector<2x32xf32>
    %18 = vector.broadcast %11 : vector<1x32xf32> to vector<2x32xf32>
    %19 = arith.addf %17, %18 : vector<2x32xf32>
    %20 = vector.shape_cast %19 : vector<2x32xf32> to vector<2x1x32xf32>
    %21 = vector.broadcast %20 : vector<2x1x32xf32> to vector<2x16x32xf32>
    %22 = arith.addf %6, %21 : vector<2x16x32xf32>
    %23 = math.tanh %22 : vector<2x16x32xf32>
    %24 = vector.shape_cast %12 : vector<1x32xf32> to vector<1x1x32xf32>
    %25 = vector.broadcast %24 : vector<1x1x32xf32> to vector<2x16x32xf32>
    %26 = arith.mulf %23, %25 : vector<2x16x32xf32>
    %cst_14 = arith.constant dense<0.000000e+00> : vector<2x16xf32>
    %27 = vector.multi_reduction <add>, %26, %cst_14 [2] : vector<2x16x32xf32> to vector<2x16xf32>
    %28 = vector.broadcast %13 : vector<1x1xf32> to vector<2x16xf32>
    %29 = arith.addf %27, %28 : vector<2x16xf32>
    %cst_15 = arith.constant dense<0xFF800000> : vector<2xf32>
    %30 = vector.multi_reduction <maximumf>, %29, %cst_15 [1] : vector<2x16xf32> to vector<2xf32>
    %31 = vector.shape_cast %30 : vector<2xf32> to vector<2x1xf32>
    %32 = vector.broadcast %31 : vector<2x1xf32> to vector<2x16xf32>
    %33 = arith.subf %29, %32 : vector<2x16xf32>
    %34 = math.exp %33 : vector<2x16xf32>
    %cst_16 = arith.constant dense<0.000000e+00> : vector<2xf32>
    %35 = vector.multi_reduction <add>, %34, %cst_16 [1] : vector<2x16xf32> to vector<2xf32>
    %36 = vector.shape_cast %35 : vector<2xf32> to vector<2x1xf32>
    %37 = tpu.reciprocal %36 : vector<2x1xf32> -> vector<2x1xf32>
    %38 = vector.broadcast %37 : vector<2x1xf32> to vector<2x16xf32>
    %39 = arith.mulf %34, %38 : vector<2x16xf32>
    %40 = vector.shape_cast %39 : vector<2x16xf32> to vector<2x16x1xf32>
    %41 = vector.broadcast %40 : vector<2x16x1xf32> to vector<2x16x32xf32>
    %42 = arith.mulf %41, %9 : vector<2x16x32xf32>
    %cst_17 = arith.constant dense<0.000000e+00> : vector<2x32xf32>
    %43 = vector.multi_reduction <add>, %42, %cst_17 [1] : vector<2x16x32xf32> to vector<2x32xf32>
    %44 = vector.broadcast %14 : vector<1x32xf32> to vector<2x32xf32>
    %45 = arith.addf %43, %44 : vector<2x32xf32>
    %c136 = arith.constant 136 : index
    %c0_18 = arith.constant 0 : index
    %46 = vector.load %arg2[%c136, %c0_18] : memref<376x128xf32, #tpu.memory_space<vmem>>, vector<32x128xf32>
    %cst_19 = arith.constant dense<0.000000e+00> : vector<2x128xf32>
    %47 = tpu.matmul %45, %46, %cst_19 {dimension_numbers = #tpu.dot_dimension_numbers<[1], [0], [0], [1], [0, 0, 1, 1], [], []>} : vector<2x32xf32>, vector<32x128xf32>, vector<2x128xf32> -> vector<2x128xf32>
    %c168 = arith.constant 168 : index
    %c0_20 = arith.constant 0 : index
    %48 = vector.load %arg2[%c168, %c0_20] : memref<376x128xf32, #tpu.memory_space<vmem>>, vector<32x128xf32>
    %cst_21 = arith.constant dense<0.000000e+00> : vector<2x128xf32>
    %49 = tpu.matmul %15, %48, %cst_21 {dimension_numbers = #tpu.dot_dimension_numbers<[1], [0], [0], [1], [0, 0, 1, 1], [], []>} : vector<2x32xf32>, vector<32x128xf32>, vector<2x128xf32> -> vector<2x128xf32>
    %50 = arith.addf %47, %49 : vector<2x128xf32>
    %c200 = arith.constant 200 : index
    %c0_22 = arith.constant 0 : index
    %51 = vector.load %arg2[%c200, %c0_22] : memref<376x128xf32, #tpu.memory_space<vmem>>, vector<1x128xf32>
    %52 = vector.broadcast %51 : vector<1x128xf32> to vector<2x128xf32>
    %53 = arith.addf %50, %52 : vector<2x128xf32>
    %54 = vector.extract_strided_slice %53 {offsets = [0, 0], sizes = [2, 32], strides = [1, 1]} : vector<2x128xf32> to vector<2x32xf32>
    %55 = arith.negf %54 : vector<2x32xf32>
    %56 = math.exp %55 : vector<2x32xf32>
    %cst_23 = arith.constant 1.000000e+00 : f32
    %57 = vector.broadcast %cst_23 : f32 to vector<2x32xf32>
    %58 = arith.addf %57, %56 : vector<2x32xf32>
    %59 = arith.divf %57, %58 : vector<2x32xf32>
    %60 = vector.extract_strided_slice %53 {offsets = [0, 32], sizes = [2, 32], strides = [1, 1]} : vector<2x128xf32> to vector<2x32xf32>
    %61 = arith.negf %60 : vector<2x32xf32>
    %62 = math.exp %61 : vector<2x32xf32>
    %cst_24 = arith.constant 1.000000e+00 : f32
    %63 = vector.broadcast %cst_24 : f32 to vector<2x32xf32>
    %64 = arith.addf %63, %62 : vector<2x32xf32>
    %65 = arith.divf %63, %64 : vector<2x32xf32>
    %66 = vector.extract_strided_slice %53 {offsets = [0, 64], sizes = [2, 32], strides = [1, 1]} : vector<2x128xf32> to vector<2x32xf32>
    %67 = math.tanh %66 : vector<2x32xf32>
    %68 = vector.extract_strided_slice %53 {offsets = [0, 96], sizes = [2, 32], strides = [1, 1]} : vector<2x128xf32> to vector<2x32xf32>
    %69 = arith.negf %68 : vector<2x32xf32>
    %70 = math.exp %69 : vector<2x32xf32>
    %cst_25 = arith.constant 1.000000e+00 : f32
    %71 = vector.broadcast %cst_25 : f32 to vector<2x32xf32>
    %72 = arith.addf %71, %70 : vector<2x32xf32>
    %73 = arith.divf %71, %72 : vector<2x32xf32>
    %74 = arith.mulf %65, %16 : vector<2x32xf32>
    %75 = arith.mulf %59, %67 : vector<2x32xf32>
    %76 = arith.addf %74, %75 : vector<2x32xf32>
    %77 = math.tanh %76 : vector<2x32xf32>
    %78 = arith.mulf %73, %77 : vector<2x32xf32>
    %c208 = arith.constant 208 : index
    %c0_26 = arith.constant 0 : index
    %79 = vector.load %arg2[%c208, %c0_26] : memref<376x128xf32, #tpu.memory_space<vmem>>, vector<32x128xf32>
    %cst_27 = arith.constant dense<0.000000e+00> : vector<2x128xf32>
    %80 = tpu.matmul %78, %79, %cst_27 {dimension_numbers = #tpu.dot_dimension_numbers<[1], [0], [0], [1], [0, 0, 1, 1], [], []>} : vector<2x32xf32>, vector<32x128xf32>, vector<2x128xf32> -> vector<2x128xf32>
    %c240 = arith.constant 240 : index
    %c0_28 = arith.constant 0 : index
    %81 = vector.load %arg2[%c240, %c0_28] : memref<376x128xf32, #tpu.memory_space<vmem>>, vector<32x128xf32>
    %cst_29 = arith.constant dense<0.000000e+00> : vector<2x128xf32>
    %82 = tpu.matmul %45, %81, %cst_29 {dimension_numbers = #tpu.dot_dimension_numbers<[1], [0], [0], [1], [0, 0, 1, 1], [], []>} : vector<2x32xf32>, vector<32x128xf32>, vector<2x128xf32> -> vector<2x128xf32>
    %83 = arith.addf %80, %82 : vector<2x128xf32>
    %c272 = arith.constant 272 : index
    %c0_30 = arith.constant 0 : index
    %84 = vector.load %arg2[%c272, %c0_30] : memref<376x128xf32, #tpu.memory_space<vmem>>, vector<1x128xf32>
    %85 = vector.broadcast %84 : vector<1x128xf32> to vector<2x128xf32>
    %86 = arith.addf %83, %85 : vector<2x128xf32>
    %87 = math.tanh %86 : vector<2x128xf32>
    %c280 = arith.constant 280 : index
    %c0_31 = arith.constant 0 : index
    %88 = vector.load %arg2[%c280, %c0_31] : memref<376x128xf32, #tpu.memory_space<vmem>>, vector<32x16xf32>
    %cst_32 = arith.constant dense<0.000000e+00> : vector<2x16xf32>
    %89 = tpu.matmul %15, %88, %cst_32 {dimension_numbers = #tpu.dot_dimension_numbers<[1], [0], [0], [1], [0, 0, 1, 1], [], []>} : vector<2x32xf32>, vector<32x16xf32>, vector<2x16xf32> -> vector<2x16xf32>
    %c312 = arith.constant 312 : index
    %c0_33 = arith.constant 0 : index
    %90 = vector.load %arg2[%c312, %c0_33] : memref<376x128xf32, #tpu.memory_space<vmem>>, vector<32x16xf32>
    %cst_34 = arith.constant dense<0.000000e+00> : vector<2x16xf32>
    %91 = tpu.matmul %78, %90, %cst_34 {dimension_numbers = #tpu.dot_dimension_numbers<[1], [0], [0], [1], [0, 0, 1, 1], [], []>} : vector<2x32xf32>, vector<32x16xf32>, vector<2x16xf32> -> vector<2x16xf32>
    %92 = arith.addf %89, %91 : vector<2x16xf32>
    %c344 = arith.constant 344 : index
    %c0_35 = arith.constant 0 : index
    %93 = vector.load %arg2[%c344, %c0_35] : memref<376x128xf32, #tpu.memory_space<vmem>>, vector<1x16xf32>
    %94 = vector.broadcast %93 : vector<1x16xf32> to vector<2x16xf32>
    %95 = arith.addf %92, %94 : vector<2x16xf32>
    %96 = math.tanh %95 : vector<2x16xf32>
    %c352 = arith.constant 352 : index
    %c0_36 = arith.constant 0 : index
    %97 = vector.load %arg2[%c352, %c0_36] : memref<376x128xf32, #tpu.memory_space<vmem>>, vector<16x128xf32>
    %cst_37 = arith.constant dense<0.000000e+00> : vector<2x128xf32>
    %98 = tpu.matmul %96, %97, %cst_37 {dimension_numbers = #tpu.dot_dimension_numbers<[1], [0], [0], [1], [0, 0, 1, 1], [], []>} : vector<2x16xf32>, vector<16x128xf32>, vector<2x128xf32> -> vector<2x128xf32>
    %c368 = arith.constant 368 : index
    %c0_38 = arith.constant 0 : index
    %99 = vector.load %arg2[%c368, %c0_38] : memref<376x128xf32, #tpu.memory_space<vmem>>, vector<1x128xf32>
    %100 = vector.broadcast %99 : vector<1x128xf32> to vector<2x128xf32>
    %101 = arith.addf %98, %100 : vector<2x128xf32>
    %c0_39 = arith.constant 0 : index
    %c0_40 = arith.constant 0 : index
    %c0_41 = arith.constant 0 : index
    %102 = vector.load %arg3[%c0_39, %c0_40, %c0_41] : memref<2x4x128xf32, #tpu.memory_space<vmem>>, vector<2x1x128xf32>
    %103 = vector.shape_cast %102 : vector<2x1x128xf32> to vector<2x128xf32>
    %104 = vector.shape_cast %87 : vector<2x128xf32> to vector<2x1x128xf32>
    tpu.vector_store %arg3[%c0_39, %c0_40, %c0_41], %104 {strides = array<i32>} : memref<2x4x128xf32, #tpu.memory_space<vmem>>, vector<2x1x128xf32>,
    %c0_42 = arith.constant 0 : index
    %c0_43 = arith.constant 0 : index
    %c0_44 = arith.constant 0 : index
    %105 = vector.load %arg4[%c0_42, %c0_43, %c0_44] : memref<2x4x128xf32, #tpu.memory_space<vmem>>, vector<2x1x128xf32>
    %106 = vector.shape_cast %105 : vector<2x1x128xf32> to vector<2x128xf32>
    %107 = vector.shape_cast %101 : vector<2x128xf32> to vector<2x1x128xf32>
    tpu.vector_store %arg4[%c0_42, %c0_43, %c0_44], %107 {strides = array<i32>} : memref<2x4x128xf32, #tpu.memory_space<vmem>>, vector<2x1x128xf32>,
    %cst_45 = arith.constant dense<0.000000e+00> : vector<2x32xf32>
    %108 = tpu.matmul %78, %10, %cst_45 {dimension_numbers = #tpu.dot_dimension_numbers<[1], [0], [0], [1], [0, 0, 1, 1], [], []>} : vector<2x32xf32>, vector<32x32xf32>, vector<2x32xf32> -> vector<2x32xf32>
    %109 = vector.broadcast %11 : vector<1x32xf32> to vector<2x32xf32>
    %110 = arith.addf %108, %109 : vector<2x32xf32>
    %111 = vector.shape_cast %110 : vector<2x32xf32> to vector<2x1x32xf32>
    %112 = vector.broadcast %111 : vector<2x1x32xf32> to vector<2x16x32xf32>
    %113 = arith.addf %6, %112 : vector<2x16x32xf32>
    %114 = math.tanh %113 : vector<2x16x32xf32>
    %115 = vector.shape_cast %12 : vector<1x32xf32> to vector<1x1x32xf32>
    %116 = vector.broadcast %115 : vector<1x1x32xf32> to vector<2x16x32xf32>
    %117 = arith.mulf %114, %116 : vector<2x16x32xf32>
    %cst_46 = arith.constant dense<0.000000e+00> : vector<2x16xf32>
    %118 = vector.multi_reduction <add>, %117, %cst_46 [2] : vector<2x16x32xf32> to vector<2x16xf32>
    %119 = vector.broadcast %13 : vector<1x1xf32> to vector<2x16xf32>
    %120 = arith.addf %118, %119 : vector<2x16xf32>
    %cst_47 = arith.constant dense<0xFF800000> : vector<2xf32>
    %121 = vector.multi_reduction <maximumf>, %120, %cst_47 [1] : vector<2x16xf32> to vector<2xf32>
    %122 = vector.shape_cast %121 : vector<2xf32> to vector<2x1xf32>
    %123 = vector.broadcast %122 : vector<2x1xf32> to vector<2x16xf32>
    %124 = arith.subf %120, %123 : vector<2x16xf32>
    %125 = math.exp %124 : vector<2x16xf32>
    %cst_48 = arith.constant dense<0.000000e+00> : vector<2xf32>
    %126 = vector.multi_reduction <add>, %125, %cst_48 [1] : vector<2x16xf32> to vector<2xf32>
    %127 = vector.shape_cast %126 : vector<2xf32> to vector<2x1xf32>
    %128 = tpu.reciprocal %127 : vector<2x1xf32> -> vector<2x1xf32>
    %129 = vector.broadcast %128 : vector<2x1xf32> to vector<2x16xf32>
    %130 = arith.mulf %125, %129 : vector<2x16xf32>
    %131 = vector.shape_cast %130 : vector<2x16xf32> to vector<2x16x1xf32>
    %132 = vector.broadcast %131 : vector<2x16x1xf32> to vector<2x16x32xf32>
    %133 = arith.mulf %132, %9 : vector<2x16x32xf32>
    %cst_49 = arith.constant dense<0.000000e+00> : vector<2x32xf32>
    %134 = vector.multi_reduction <add>, %133, %cst_49 [1] : vector<2x16x32xf32> to vector<2x32xf32>
    %135 = vector.broadcast %14 : vector<1x32xf32> to vector<2x32xf32>
    %136 = arith.addf %134, %135 : vector<2x32xf32>
    %c136_50 = arith.constant 136 : index
    %c0_51 = arith.constant 0 : index
    %137 = vector.load %arg2[%c136_50, %c0_51] : memref<376x128xf32, #tpu.memory_space<vmem>>, vector<32x128xf32>
    %cst_52 = arith.constant dense<0.000000e+00> : vector<2x128xf32>
    %138 = tpu.matmul %136, %137, %cst_52 {dimension_numbers = #tpu.dot_dimension_numbers<[1], [0], [0], [1], [0, 0, 1, 1], [], []>} : vector<2x32xf32>, vector<32x128xf32>, vector<2x128xf32> -> vector<2x128xf32>
    %c168_53 = arith.constant 168 : index
    %c0_54 = arith.constant 0 : index
    %139 = vector.load %arg2[%c168_53, %c0_54] : memref<376x128xf32, #tpu.memory_space<vmem>>, vector<32x128xf32>
    %cst_55 = arith.constant dense<0.000000e+00> : vector<2x128xf32>
    %140 = tpu.matmul %78, %139, %cst_55 {dimension_numbers = #tpu.dot_dimension_numbers<[1], [0], [0], [1], [0, 0, 1, 1], [], []>} : vector<2x32xf32>, vector<32x128xf32>, vector<2x128xf32> -> vector<2x128xf32>
    %141 = arith.addf %138, %140 : vector<2x128xf32>
    %c200_56 = arith.constant 200 : index
    %c0_57 = arith.constant 0 : index
    %142 = vector.load %arg2[%c200_56, %c0_57] : memref<376x128xf32, #tpu.memory_space<vmem>>, vector<1x128xf32>
    %143 = vector.broadcast %142 : vector<1x128xf32> to vector<2x128xf32>
    %144 = arith.addf %141, %143 : vector<2x128xf32>
    %145 = vector.extract_strided_slice %144 {offsets = [0, 0], sizes = [2, 32], strides = [1, 1]} : vector<2x128xf32> to vector<2x32xf32>
    %146 = arith.negf %145 : vector<2x32xf32>
    %147 = math.exp %146 : vector<2x32xf32>
    %cst_58 = arith.constant 1.000000e+00 : f32
    %148 = vector.broadcast %cst_58 : f32 to vector<2x32xf32>
    %149 = arith.addf %148, %147 : vector<2x32xf32>
    %150 = arith.divf %148, %149 : vector<2x32xf32>
    %151 = vector.extract_strided_slice %144 {offsets = [0, 32], sizes = [2, 32], strides = [1, 1]} : vector<2x128xf32> to vector<2x32xf32>
    %152 = arith.negf %151 : vector<2x32xf32>
    %153 = math.exp %152 : vector<2x32xf32>
    %cst_59 = arith.constant 1.000000e+00 : f32
    %154 = vector.broadcast %cst_59 : f32 to vector<2x32xf32>
    %155 = arith.addf %154, %153 : vector<2x32xf32>
    %156 = arith.divf %154, %155 : vector<2x32xf32>
    %157 = vector.extract_strided_slice %144 {offsets = [0, 64], sizes = [2, 32], strides = [1, 1]} : vector<2x128xf32> to vector<2x32xf32>
    %158 = math.tanh %157 : vector<2x32xf32>
    %159 = vector.extract_strided_slice %144 {offsets = [0, 96], sizes = [2, 32], strides = [1, 1]} : vector<2x128xf32> to vector<2x32xf32>
    %160 = arith.negf %159 : vector<2x32xf32>
    %161 = math.exp %160 : vector<2x32xf32>
    %cst_60 = arith.constant 1.000000e+00 : f32
    %162 = vector.broadcast %cst_60 : f32 to vector<2x32xf32>
    %163 = arith.addf %162, %161 : vector<2x32xf32>
    %164 = arith.divf %162, %163 : vector<2x32xf32>
    %165 = arith.mulf %156, %76 : vector<2x32xf32>
    %166 = arith.mulf %150, %158 : vector<2x32xf32>
    %167 = arith.addf %165, %166 : vector<2x32xf32>
    %168 = math.tanh %167 : vector<2x32xf32>
    %169 = arith.mulf %164, %168 : vector<2x32xf32>
    %c208_61 = arith.constant 208 : index
    %c0_62 = arith.constant 0 : index
    %170 = vector.load %arg2[%c208_61, %c0_62] : memref<376x128xf32, #tpu.memory_space<vmem>>, vector<32x128xf32>
    %cst_63 = arith.constant dense<0.000000e+00> : vector<2x128xf32>
    %171 = tpu.matmul %169, %170, %cst_63 {dimension_numbers = #tpu.dot_dimension_numbers<[1], [0], [0], [1], [0, 0, 1, 1], [], []>} : vector<2x32xf32>, vector<32x128xf32>, vector<2x128xf32> -> vector<2x128xf32>
    %c240_64 = arith.constant 240 : index
    %c0_65 = arith.constant 0 : index
    %172 = vector.load %arg2[%c240_64, %c0_65] : memref<376x128xf32, #tpu.memory_space<vmem>>, vector<32x128xf32>
    %cst_66 = arith.constant dense<0.000000e+00> : vector<2x128xf32>
    %173 = tpu.matmul %136, %172, %cst_66 {dimension_numbers = #tpu.dot_dimension_numbers<[1], [0], [0], [1], [0, 0, 1, 1], [], []>} : vector<2x32xf32>, vector<32x128xf32>, vector<2x128xf32> -> vector<2x128xf32>
    %174 = arith.addf %171, %173 : vector<2x128xf32>
    %c272_67 = arith.constant 272 : index
    %c0_68 = arith.constant 0 : index
    %175 = vector.load %arg2[%c272_67, %c0_68] : memref<376x128xf32, #tpu.memory_space<vmem>>, vector<1x128xf32>
    %176 = vector.broadcast %175 : vector<1x128xf32> to vector<2x128xf32>
    %177 = arith.addf %174, %176 : vector<2x128xf32>
    %178 = math.tanh %177 : vector<2x128xf32>
    %c280_69 = arith.constant 280 : index
    %c0_70 = arith.constant 0 : index
    %179 = vector.load %arg2[%c280_69, %c0_70] : memref<376x128xf32, #tpu.memory_space<vmem>>, vector<32x16xf32>
    %cst_71 = arith.constant dense<0.000000e+00> : vector<2x16xf32>
    %180 = tpu.matmul %78, %179, %cst_71 {dimension_numbers = #tpu.dot_dimension_numbers<[1], [0], [0], [1], [0, 0, 1, 1], [], []>} : vector<2x32xf32>, vector<32x16xf32>, vector<2x16xf32> -> vector<2x16xf32>
    %c312_72 = arith.constant 312 : index
    %c0_73 = arith.constant 0 : index
    %181 = vector.load %arg2[%c312_72, %c0_73] : memref<376x128xf32, #tpu.memory_space<vmem>>, vector<32x16xf32>
    %cst_74 = arith.constant dense<0.000000e+00> : vector<2x16xf32>
    %182 = tpu.matmul %169, %181, %cst_74 {dimension_numbers = #tpu.dot_dimension_numbers<[1], [0], [0], [1], [0, 0, 1, 1], [], []>} : vector<2x32xf32>, vector<32x16xf32>, vector<2x16xf32> -> vector<2x16xf32>
    %183 = arith.addf %180, %182 : vector<2x16xf32>
    %c344_75 = arith.constant 344 : index
    %c0_76 = arith.constant 0 : index
    %184 = vector.load %arg2[%c344_75, %c0_76] : memref<376x128xf32, #tpu.memory_space<vmem>>, vector<1x16xf32>
    %185 = vector.broadcast %184 : vector<1x16xf32> to vector<2x16xf32>
    %186 = arith.addf %183, %185 : vector<2x16xf32>
    %187 = math.tanh %186 : vector<2x16xf32>
    %c352_77 = arith.constant 352 : index
    %c0_78 = arith.constant 0 : index
    %188 = vector.load %arg2[%c352_77, %c0_78] : memref<376x128xf32, #tpu.memory_space<vmem>>, vector<16x128xf32>
    %cst_79 = arith.constant dense<0.000000e+00> : vector<2x128xf32>
    %189 = tpu.matmul %187, %188, %cst_79 {dimension_numbers = #tpu.dot_dimension_numbers<[1], [0], [0], [1], [0, 0, 1, 1], [], []>} : vector<2x16xf32>, vector<16x128xf32>, vector<2x128xf32> -> vector<2x128xf32>
    %c368_80 = arith.constant 368 : index
    %c0_81 = arith.constant 0 : index
    %190 = vector.load %arg2[%c368_80, %c0_81] : memref<376x128xf32, #tpu.memory_space<vmem>>, vector<1x128xf32>
    %191 = vector.broadcast %190 : vector<1x128xf32> to vector<2x128xf32>
    %192 = arith.addf %189, %191 : vector<2x128xf32>
    %c0_82 = arith.constant 0 : index
    %c1 = arith.constant 1 : index
    %c0_83 = arith.constant 0 : index
    %193 = vector.load %arg3[%c0_82, %c1, %c0_83] : memref<2x4x128xf32, #tpu.memory_space<vmem>>, vector<2x1x128xf32>
    %194 = vector.shape_cast %193 : vector<2x1x128xf32> to vector<2x128xf32>
    %195 = vector.shape_cast %178 : vector<2x128xf32> to vector<2x1x128xf32>
    tpu.vector_store %arg3[%c0_82, %c1, %c0_83], %195 {strides = array<i32>} : memref<2x4x128xf32, #tpu.memory_space<vmem>>, vector<2x1x128xf32>,
    %c0_84 = arith.constant 0 : index
    %c1_85 = arith.constant 1 : index
    %c0_86 = arith.constant 0 : index
    %196 = vector.load %arg4[%c0_84, %c1_85, %c0_86] : memref<2x4x128xf32, #tpu.memory_space<vmem>>, vector<2x1x128xf32>
    %197 = vector.shape_cast %196 : vector<2x1x128xf32> to vector<2x128xf32>
    %198 = vector.shape_cast %192 : vector<2x128xf32> to vector<2x1x128xf32>
    tpu.vector_store %arg4[%c0_84, %c1_85, %c0_86], %198 {strides = array<i32>} : memref<2x4x128xf32, #tpu.memory_space<vmem>>, vector<2x1x128xf32>,
    %cst_87 = arith.constant dense<0.000000e+00> : vector<2x32xf32>
    %199 = tpu.matmul %169, %10, %cst_87 {dimension_numbers = #tpu.dot_dimension_numbers<[1], [0], [0], [1], [0, 0, 1, 1], [], []>} : vector<2x32xf32>, vector<32x32xf32>, vector<2x32xf32> -> vector<2x32xf32>
    %200 = vector.broadcast %11 : vector<1x32xf32> to vector<2x32xf32>
    %201 = arith.addf %199, %200 : vector<2x32xf32>
    %202 = vector.shape_cast %201 : vector<2x32xf32> to vector<2x1x32xf32>
    %203 = vector.broadcast %202 : vector<2x1x32xf32> to vector<2x16x32xf32>
    %204 = arith.addf %6, %203 : vector<2x16x32xf32>
    %205 = math.tanh %204 : vector<2x16x32xf32>
    %206 = vector.shape_cast %12 : vector<1x32xf32> to vector<1x1x32xf32>
    %207 = vector.broadcast %206 : vector<1x1x32xf32> to vector<2x16x32xf32>
    %208 = arith.mulf %205, %207 : vector<2x16x32xf32>
    %cst_88 = arith.constant dense<0.000000e+00> : vector<2x16xf32>
    %209 = vector.multi_reduction <add>, %208, %cst_88 [2] : vector<2x16x32xf32> to vector<2x16xf32>
    %210 = vector.broadcast %13 : vector<1x1xf32> to vector<2x16xf32>
    %211 = arith.addf %209, %210 : vector<2x16xf32>
    %cst_89 = arith.constant dense<0xFF800000> : vector<2xf32>
    %212 = vector.multi_reduction <maximumf>, %211, %cst_89 [1] : vector<2x16xf32> to vector<2xf32>
    %213 = vector.shape_cast %212 : vector<2xf32> to vector<2x1xf32>
    %214 = vector.broadcast %213 : vector<2x1xf32> to vector<2x16xf32>
    %215 = arith.subf %211, %214 : vector<2x16xf32>
    %216 = math.exp %215 : vector<2x16xf32>
    %cst_90 = arith.constant dense<0.000000e+00> : vector<2xf32>
    %217 = vector.multi_reduction <add>, %216, %cst_90 [1] : vector<2x16xf32> to vector<2xf32>
    %218 = vector.shape_cast %217 : vector<2xf32> to vector<2x1xf32>
    %219 = tpu.reciprocal %218 : vector<2x1xf32> -> vector<2x1xf32>
    %220 = vector.broadcast %219 : vector<2x1xf32> to vector<2x16xf32>
    %221 = arith.mulf %216, %220 : vector<2x16xf32>
    %222 = vector.shape_cast %221 : vector<2x16xf32> to vector<2x16x1xf32>
    %223 = vector.broadcast %222 : vector<2x16x1xf32> to vector<2x16x32xf32>
    %224 = arith.mulf %223, %9 : vector<2x16x32xf32>
    %cst_91 = arith.constant dense<0.000000e+00> : vector<2x32xf32>
    %225 = vector.multi_reduction <add>, %224, %cst_91 [1] : vector<2x16x32xf32> to vector<2x32xf32>
    %226 = vector.broadcast %14 : vector<1x32xf32> to vector<2x32xf32>
    %227 = arith.addf %225, %226 : vector<2x32xf32>
    %c136_92 = arith.constant 136 : index
    %c0_93 = arith.constant 0 : index
    %228 = vector.load %arg2[%c136_92, %c0_93] : memref<376x128xf32, #tpu.memory_space<vmem>>, vector<32x128xf32>
    %cst_94 = arith.constant dense<0.000000e+00> : vector<2x128xf32>
    %229 = tpu.matmul %227, %228, %cst_94 {dimension_numbers = #tpu.dot_dimension_numbers<[1], [0], [0], [1], [0, 0, 1, 1], [], []>} : vector<2x32xf32>, vector<32x128xf32>, vector<2x128xf32> -> vector<2x128xf32>
    %c168_95 = arith.constant 168 : index
    %c0_96 = arith.constant 0 : index
    %230 = vector.load %arg2[%c168_95, %c0_96] : memref<376x128xf32, #tpu.memory_space<vmem>>, vector<32x128xf32>
    %cst_97 = arith.constant dense<0.000000e+00> : vector<2x128xf32>
    %231 = tpu.matmul %169, %230, %cst_97 {dimension_numbers = #tpu.dot_dimension_numbers<[1], [0], [0], [1], [0, 0, 1, 1], [], []>} : vector<2x32xf32>, vector<32x128xf32>, vector<2x128xf32> -> vector<2x128xf32>
    %232 = arith.addf %229, %231 : vector<2x128xf32>
    %c200_98 = arith.constant 200 : index
    %c0_99 = arith.constant 0 : index
    %233 = vector.load %arg2[%c200_98, %c0_99] : memref<376x128xf32, #tpu.memory_space<vmem>>, vector<1x128xf32>
    %234 = vector.broadcast %233 : vector<1x128xf32> to vector<2x128xf32>
    %235 = arith.addf %232, %234 : vector<2x128xf32>
    %236 = vector.extract_strided_slice %235 {offsets = [0, 0], sizes = [2, 32], strides = [1, 1]} : vector<2x128xf32> to vector<2x32xf32>
    %237 = arith.negf %236 : vector<2x32xf32>
    %238 = math.exp %237 : vector<2x32xf32>
    %cst_100 = arith.constant 1.000000e+00 : f32
    %239 = vector.broadcast %cst_100 : f32 to vector<2x32xf32>
    %240 = arith.addf %239, %238 : vector<2x32xf32>
    %241 = arith.divf %239, %240 : vector<2x32xf32>
    %242 = vector.extract_strided_slice %235 {offsets = [0, 32], sizes = [2, 32], strides = [1, 1]} : vector<2x128xf32> to vector<2x32xf32>
    %243 = arith.negf %242 : vector<2x32xf32>
    %244 = math.exp %243 : vector<2x32xf32>
    %cst_101 = arith.constant 1.000000e+00 : f32
    %245 = vector.broadcast %cst_101 : f32 to vector<2x32xf32>
    %246 = arith.addf %245, %244 : vector<2x32xf32>
    %247 = arith.divf %245, %246 : vector<2x32xf32>
    %248 = vector.extract_strided_slice %235 {offsets = [0, 64], sizes = [2, 32], strides = [1, 1]} : vector<2x128xf32> to vector<2x32xf32>
    %249 = math.tanh %248 : vector<2x32xf32>
    %250 = vector.extract_strided_slice %235 {offsets = [0, 96], sizes = [2, 32], strides = [1, 1]} : vector<2x128xf32> to vector<2x32xf32>
    %251 = arith.negf %250 : vector<2x32xf32>
    %252 = math.exp %251 : vector<2x32xf32>
    %cst_102 = arith.constant 1.000000e+00 : f32
    %253 = vector.broadcast %cst_102 : f32 to vector<2x32xf32>
    %254 = arith.addf %253, %252 : vector<2x32xf32>
    %255 = arith.divf %253, %254 : vector<2x32xf32>
    %256 = arith.mulf %247, %167 : vector<2x32xf32>
    %257 = arith.mulf %241, %249 : vector<2x32xf32>
    %258 = arith.addf %256, %257 : vector<2x32xf32>
    %259 = math.tanh %258 : vector<2x32xf32>
    %260 = arith.mulf %255, %259 : vector<2x32xf32>
    %c208_103 = arith.constant 208 : index
    %c0_104 = arith.constant 0 : index
    %261 = vector.load %arg2[%c208_103, %c0_104] : memref<376x128xf32, #tpu.memory_space<vmem>>, vector<32x128xf32>
    %cst_105 = arith.constant dense<0.000000e+00> : vector<2x128xf32>
    %262 = tpu.matmul %260, %261, %cst_105 {dimension_numbers = #tpu.dot_dimension_numbers<[1], [0], [0], [1], [0, 0, 1, 1], [], []>} : vector<2x32xf32>, vector<32x128xf32>, vector<2x128xf32> -> vector<2x128xf32>
    %c240_106 = arith.constant 240 : index
    %c0_107 = arith.constant 0 : index
    %263 = vector.load %arg2[%c240_106, %c0_107] : memref<376x128xf32, #tpu.memory_space<vmem>>, vector<32x128xf32>
    %cst_108 = arith.constant dense<0.000000e+00> : vector<2x128xf32>
    %264 = tpu.matmul %227, %263, %cst_108 {dimension_numbers = #tpu.dot_dimension_numbers<[1], [0], [0], [1], [0, 0, 1, 1], [], []>} : vector<2x32xf32>, vector<32x128xf32>, vector<2x128xf32> -> vector<2x128xf32>
    %265 = arith.addf %262, %264 : vector<2x128xf32>
    %c272_109 = arith.constant 272 : index
    %c0_110 = arith.constant 0 : index
    %266 = vector.load %arg2[%c272_109, %c0_110] : memref<376x128xf32, #tpu.memory_space<vmem>>, vector<1x128xf32>
    %267 = vector.broadcast %266 : vector<1x128xf32> to vector<2x128xf32>
    %268 = arith.addf %265, %267 : vector<2x128xf32>
    %269 = math.tanh %268 : vector<2x128xf32>
    %c280_111 = arith.constant 280 : index
    %c0_112 = arith.constant 0 : index
    %270 = vector.load %arg2[%c280_111, %c0_112] : memref<376x128xf32, #tpu.memory_space<vmem>>, vector<32x16xf32>
    %cst_113 = arith.constant dense<0.000000e+00> : vector<2x16xf32>
    %271 = tpu.matmul %169, %270, %cst_113 {dimension_numbers = #tpu.dot_dimension_numbers<[1], [0], [0], [1], [0, 0, 1, 1], [], []>} : vector<2x32xf32>, vector<32x16xf32>, vector<2x16xf32> -> vector<2x16xf32>
    %c312_114 = arith.constant 312 : index
    %c0_115 = arith.constant 0 : index
    %272 = vector.load %arg2[%c312_114, %c0_115] : memref<376x128xf32, #tpu.memory_space<vmem>>, vector<32x16xf32>
    %cst_116 = arith.constant dense<0.000000e+00> : vector<2x16xf32>
    %273 = tpu.matmul %260, %272, %cst_116 {dimension_numbers = #tpu.dot_dimension_numbers<[1], [0], [0], [1], [0, 0, 1, 1], [], []>} : vector<2x32xf32>, vector<32x16xf32>, vector<2x16xf32> -> vector<2x16xf32>
    %274 = arith.addf %271, %273 : vector<2x16xf32>
    %c344_117 = arith.constant 344 : index
    %c0_118 = arith.constant 0 : index
    %275 = vector.load %arg2[%c344_117, %c0_118] : memref<376x128xf32, #tpu.memory_space<vmem>>, vector<1x16xf32>
    %276 = vector.broadcast %275 : vector<1x16xf32> to vector<2x16xf32>
    %277 = arith.addf %274, %276 : vector<2x16xf32>
    %278 = math.tanh %277 : vector<2x16xf32>
    %c352_119 = arith.constant 352 : index
    %c0_120 = arith.constant 0 : index
    %279 = vector.load %arg2[%c352_119, %c0_120] : memref<376x128xf32, #tpu.memory_space<vmem>>, vector<16x128xf32>
    %cst_121 = arith.constant dense<0.000000e+00> : vector<2x128xf32>
    %280 = tpu.matmul %278, %279, %cst_121 {dimension_numbers = #tpu.dot_dimension_numbers<[1], [0], [0], [1], [0, 0, 1, 1], [], []>} : vector<2x16xf32>, vector<16x128xf32>, vector<2x128xf32> -> vector<2x128xf32>
    %c368_122 = arith.constant 368 : index
    %c0_123 = arith.constant 0 : index
    %281 = vector.load %arg2[%c368_122, %c0_123] : memref<376x128xf32, #tpu.memory_space<vmem>>, vector<1x128xf32>
    %282 = vector.broadcast %281 : vector<1x128xf32> to vector<2x128xf32>
    %283 = arith.addf %280, %282 : vector<2x128xf32>
    %c0_124 = arith.constant 0 : index
    %c2 = arith.constant 2 : index
    %c0_125 = arith.constant 0 : index
    %284 = vector.load %arg3[%c0_124, %c2, %c0_125] : memref<2x4x128xf32, #tpu.memory_space<vmem>>, vector<2x1x128xf32>
    %285 = vector.shape_cast %284 : vector<2x1x128xf32> to vector<2x128xf32>
    %286 = vector.shape_cast %269 : vector<2x128xf32> to vector<2x1x128xf32>
    tpu.vector_store %arg3[%c0_124, %c2, %c0_125], %286 {strides = array<i32>} : memref<2x4x128xf32, #tpu.memory_space<vmem>>, vector<2x1x128xf32>,
    %c0_126 = arith.constant 0 : index
    %c2_127 = arith.constant 2 : index
    %c0_128 = arith.constant 0 : index
    %287 = vector.load %arg4[%c0_126, %c2_127, %c0_128] : memref<2x4x128xf32, #tpu.memory_space<vmem>>, vector<2x1x128xf32>
    %288 = vector.shape_cast %287 : vector<2x1x128xf32> to vector<2x128xf32>
    %289 = vector.shape_cast %283 : vector<2x128xf32> to vector<2x1x128xf32>
    tpu.vector_store %arg4[%c0_126, %c2_127, %c0_128], %289 {strides = array<i32>} : memref<2x4x128xf32, #tpu.memory_space<vmem>>, vector<2x1x128xf32>,
    %cst_129 = arith.constant dense<0.000000e+00> : vector<2x32xf32>
    %290 = tpu.matmul %260, %10, %cst_129 {dimension_numbers = #tpu.dot_dimension_numbers<[1], [0], [0], [1], [0, 0, 1, 1], [], []>} : vector<2x32xf32>, vector<32x32xf32>, vector<2x32xf32> -> vector<2x32xf32>
    %291 = vector.broadcast %11 : vector<1x32xf32> to vector<2x32xf32>
    %292 = arith.addf %290, %291 : vector<2x32xf32>
    %293 = vector.shape_cast %292 : vector<2x32xf32> to vector<2x1x32xf32>
    %294 = vector.broadcast %293 : vector<2x1x32xf32> to vector<2x16x32xf32>
    %295 = arith.addf %6, %294 : vector<2x16x32xf32>
    %296 = math.tanh %295 : vector<2x16x32xf32>
    %297 = vector.shape_cast %12 : vector<1x32xf32> to vector<1x1x32xf32>
    %298 = vector.broadcast %297 : vector<1x1x32xf32> to vector<2x16x32xf32>
    %299 = arith.mulf %296, %298 : vector<2x16x32xf32>
    %cst_130 = arith.constant dense<0.000000e+00> : vector<2x16xf32>
    %300 = vector.multi_reduction <add>, %299, %cst_130 [2] : vector<2x16x32xf32> to vector<2x16xf32>
    %301 = vector.broadcast %13 : vector<1x1xf32> to vector<2x16xf32>
    %302 = arith.addf %300, %301 : vector<2x16xf32>
    %cst_131 = arith.constant dense<0xFF800000> : vector<2xf32>
    %303 = vector.multi_reduction <maximumf>, %302, %cst_131 [1] : vector<2x16xf32> to vector<2xf32>
    %304 = vector.shape_cast %303 : vector<2xf32> to vector<2x1xf32>
    %305 = vector.broadcast %304 : vector<2x1xf32> to vector<2x16xf32>
    %306 = arith.subf %302, %305 : vector<2x16xf32>
    %307 = math.exp %306 : vector<2x16xf32>
    %cst_132 = arith.constant dense<0.000000e+00> : vector<2xf32>
    %308 = vector.multi_reduction <add>, %307, %cst_132 [1] : vector<2x16xf32> to vector<2xf32>
    %309 = vector.shape_cast %308 : vector<2xf32> to vector<2x1xf32>
    %310 = tpu.reciprocal %309 : vector<2x1xf32> -> vector<2x1xf32>
    %311 = vector.broadcast %310 : vector<2x1xf32> to vector<2x16xf32>
    %312 = arith.mulf %307, %311 : vector<2x16xf32>
    %313 = vector.shape_cast %312 : vector<2x16xf32> to vector<2x16x1xf32>
    %314 = vector.broadcast %313 : vector<2x16x1xf32> to vector<2x16x32xf32>
    %315 = arith.mulf %314, %9 : vector<2x16x32xf32>
    %cst_133 = arith.constant dense<0.000000e+00> : vector<2x32xf32>
    %316 = vector.multi_reduction <add>, %315, %cst_133 [1] : vector<2x16x32xf32> to vector<2x32xf32>
    %317 = vector.broadcast %14 : vector<1x32xf32> to vector<2x32xf32>
    %318 = arith.addf %316, %317 : vector<2x32xf32>
    %c136_134 = arith.constant 136 : index
    %c0_135 = arith.constant 0 : index
    %319 = vector.load %arg2[%c136_134, %c0_135] : memref<376x128xf32, #tpu.memory_space<vmem>>, vector<32x128xf32>
    %cst_136 = arith.constant dense<0.000000e+00> : vector<2x128xf32>
    %320 = tpu.matmul %318, %319, %cst_136 {dimension_numbers = #tpu.dot_dimension_numbers<[1], [0], [0], [1], [0, 0, 1, 1], [], []>} : vector<2x32xf32>, vector<32x128xf32>, vector<2x128xf32> -> vector<2x128xf32>
    %c168_137 = arith.constant 168 : index
    %c0_138 = arith.constant 0 : index
    %321 = vector.load %arg2[%c168_137, %c0_138] : memref<376x128xf32, #tpu.memory_space<vmem>>, vector<32x128xf32>
    %cst_139 = arith.constant dense<0.000000e+00> : vector<2x128xf32>
    %322 = tpu.matmul %260, %321, %cst_139 {dimension_numbers = #tpu.dot_dimension_numbers<[1], [0], [0], [1], [0, 0, 1, 1], [], []>} : vector<2x32xf32>, vector<32x128xf32>, vector<2x128xf32> -> vector<2x128xf32>
    %323 = arith.addf %320, %322 : vector<2x128xf32>
    %c200_140 = arith.constant 200 : index
    %c0_141 = arith.constant 0 : index
    %324 = vector.load %arg2[%c200_140, %c0_141] : memref<376x128xf32, #tpu.memory_space<vmem>>, vector<1x128xf32>
    %325 = vector.broadcast %324 : vector<1x128xf32> to vector<2x128xf32>
    %326 = arith.addf %323, %325 : vector<2x128xf32>
    %327 = vector.extract_strided_slice %326 {offsets = [0, 0], sizes = [2, 32], strides = [1, 1]} : vector<2x128xf32> to vector<2x32xf32>
    %328 = arith.negf %327 : vector<2x32xf32>
    %329 = math.exp %328 : vector<2x32xf32>
    %cst_142 = arith.constant 1.000000e+00 : f32
    %330 = vector.broadcast %cst_142 : f32 to vector<2x32xf32>
    %331 = arith.addf %330, %329 : vector<2x32xf32>
    %332 = arith.divf %330, %331 : vector<2x32xf32>
    %333 = vector.extract_strided_slice %326 {offsets = [0, 32], sizes = [2, 32], strides = [1, 1]} : vector<2x128xf32> to vector<2x32xf32>
    %334 = arith.negf %333 : vector<2x32xf32>
    %335 = math.exp %334 : vector<2x32xf32>
    %cst_143 = arith.constant 1.000000e+00 : f32
    %336 = vector.broadcast %cst_143 : f32 to vector<2x32xf32>
    %337 = arith.addf %336, %335 : vector<2x32xf32>
    %338 = arith.divf %336, %337 : vector<2x32xf32>
    %339 = vector.extract_strided_slice %326 {offsets = [0, 64], sizes = [2, 32], strides = [1, 1]} : vector<2x128xf32> to vector<2x32xf32>
    %340 = math.tanh %339 : vector<2x32xf32>
    %341 = vector.extract_strided_slice %326 {offsets = [0, 96], sizes = [2, 32], strides = [1, 1]} : vector<2x128xf32> to vector<2x32xf32>
    %342 = arith.negf %341 : vector<2x32xf32>
    %343 = math.exp %342 : vector<2x32xf32>
    %cst_144 = arith.constant 1.000000e+00 : f32
    %344 = vector.broadcast %cst_144 : f32 to vector<2x32xf32>
    %345 = arith.addf %344, %343 : vector<2x32xf32>
    %346 = arith.divf %344, %345 : vector<2x32xf32>
    %347 = arith.mulf %338, %258 : vector<2x32xf32>
    %348 = arith.mulf %332, %340 : vector<2x32xf32>
    %349 = arith.addf %347, %348 : vector<2x32xf32>
    %350 = math.tanh %349 : vector<2x32xf32>
    %351 = arith.mulf %346, %350 : vector<2x32xf32>
    %c208_145 = arith.constant 208 : index
    %c0_146 = arith.constant 0 : index
    %352 = vector.load %arg2[%c208_145, %c0_146] : memref<376x128xf32, #tpu.memory_space<vmem>>, vector<32x128xf32>
    %cst_147 = arith.constant dense<0.000000e+00> : vector<2x128xf32>
    %353 = tpu.matmul %351, %352, %cst_147 {dimension_numbers = #tpu.dot_dimension_numbers<[1], [0], [0], [1], [0, 0, 1, 1], [], []>} : vector<2x32xf32>, vector<32x128xf32>, vector<2x128xf32> -> vector<2x128xf32>
    %c240_148 = arith.constant 240 : index
    %c0_149 = arith.constant 0 : index
    %354 = vector.load %arg2[%c240_148, %c0_149] : memref<376x128xf32, #tpu.memory_space<vmem>>, vector<32x128xf32>
    %cst_150 = arith.constant dense<0.000000e+00> : vector<2x128xf32>
    %355 = tpu.matmul %318, %354, %cst_150 {dimension_numbers = #tpu.dot_dimension_numbers<[1], [0], [0], [1], [0, 0, 1, 1], [], []>} : vector<2x32xf32>, vector<32x128xf32>, vector<2x128xf32> -> vector<2x128xf32>
    %356 = arith.addf %353, %355 : vector<2x128xf32>
    %c272_151 = arith.constant 272 : index
    %c0_152 = arith.constant 0 : index
    %357 = vector.load %arg2[%c272_151, %c0_152] : memref<376x128xf32, #tpu.memory_space<vmem>>, vector<1x128xf32>
    %358 = vector.broadcast %357 : vector<1x128xf32> to vector<2x128xf32>
    %359 = arith.addf %356, %358 : vector<2x128xf32>
    %360 = math.tanh %359 : vector<2x128xf32>
    %c280_153 = arith.constant 280 : index
    %c0_154 = arith.constant 0 : index
    %361 = vector.load %arg2[%c280_153, %c0_154] : memref<376x128xf32, #tpu.memory_space<vmem>>, vector<32x16xf32>
    %cst_155 = arith.constant dense<0.000000e+00> : vector<2x16xf32>
    %362 = tpu.matmul %260, %361, %cst_155 {dimension_numbers = #tpu.dot_dimension_numbers<[1], [0], [0], [1], [0, 0, 1, 1], [], []>} : vector<2x32xf32>, vector<32x16xf32>, vector<2x16xf32> -> vector<2x16xf32>
    %c312_156 = arith.constant 312 : index
    %c0_157 = arith.constant 0 : index
    %363 = vector.load %arg2[%c312_156, %c0_157] : memref<376x128xf32, #tpu.memory_space<vmem>>, vector<32x16xf32>
    %cst_158 = arith.constant dense<0.000000e+00> : vector<2x16xf32>
    %364 = tpu.matmul %351, %363, %cst_158 {dimension_numbers = #tpu.dot_dimension_numbers<[1], [0], [0], [1], [0, 0, 1, 1], [], []>} : vector<2x32xf32>, vector<32x16xf32>, vector<2x16xf32> -> vector<2x16xf32>
    %365 = arith.addf %362, %364 : vector<2x16xf32>
    %c344_159 = arith.constant 344 : index
    %c0_160 = arith.constant 0 : index
    %366 = vector.load %arg2[%c344_159, %c0_160] : memref<376x128xf32, #tpu.memory_space<vmem>>, vector<1x16xf32>
    %367 = vector.broadcast %366 : vector<1x16xf32> to vector<2x16xf32>
    %368 = arith.addf %365, %367 : vector<2x16xf32>
    %369 = math.tanh %368 : vector<2x16xf32>
    %c352_161 = arith.constant 352 : index
    %c0_162 = arith.constant 0 : index
    %370 = vector.load %arg2[%c352_161, %c0_162] : memref<376x128xf32, #tpu.memory_space<vmem>>, vector<16x128xf32>
    %cst_163 = arith.constant dense<0.000000e+00> : vector<2x128xf32>
    %371 = tpu.matmul %369, %370, %cst_163 {dimension_numbers = #tpu.dot_dimension_numbers<[1], [0], [0], [1], [0, 0, 1, 1], [], []>} : vector<2x16xf32>, vector<16x128xf32>, vector<2x128xf32> -> vector<2x128xf32>
    %c368_164 = arith.constant 368 : index
    %c0_165 = arith.constant 0 : index
    %372 = vector.load %arg2[%c368_164, %c0_165] : memref<376x128xf32, #tpu.memory_space<vmem>>, vector<1x128xf32>
    %373 = vector.broadcast %372 : vector<1x128xf32> to vector<2x128xf32>
    %374 = arith.addf %371, %373 : vector<2x128xf32>
    %c0_166 = arith.constant 0 : index
    %c3 = arith.constant 3 : index
    %c0_167 = arith.constant 0 : index
    %375 = vector.load %arg3[%c0_166, %c3, %c0_167] : memref<2x4x128xf32, #tpu.memory_space<vmem>>, vector<2x1x128xf32>
    %376 = vector.shape_cast %375 : vector<2x1x128xf32> to vector<2x128xf32>
    %377 = vector.shape_cast %360 : vector<2x128xf32> to vector<2x1x128xf32>
    tpu.vector_store %arg3[%c0_166, %c3, %c0_167], %377 {strides = array<i32>} : memref<2x4x128xf32, #tpu.memory_space<vmem>>, vector<2x1x128xf32>,
    %c0_168 = arith.constant 0 : index
    %c3_169 = arith.constant 3 : index
    %c0_170 = arith.constant 0 : index
    %378 = vector.load %arg4[%c0_168, %c3_169, %c0_170] : memref<2x4x128xf32, #tpu.memory_space<vmem>>, vector<2x1x128xf32>
    %379 = vector.shape_cast %378 : vector<2x1x128xf32> to vector<2x128xf32>
    %380 = vector.shape_cast %374 : vector<2x128xf32> to vector<2x1x128xf32>
    tpu.vector_store %arg4[%c0_168, %c3_169, %c0_170], %380 {strides = array<i32>} : memref<2x4x128xf32, #tpu.memory_space<vmem>>, vector<2x1x128xf32>,
    return
  }
  func.func @transform_0(%arg0: i32) -> (i32, i32) {
    %c0_i32 = arith.constant 0 : i32
    %c0_i32_0 = arith.constant 0 : i32
    %c0_i32_1 = arith.constant 0 : i32
    return %c0_i32, %c0_i32_0 : i32, i32
  }
  func.func @transform_1(%arg0: i32) -> (i32, i32) {
    %c0_i32 = arith.constant 0 : i32
    %c0_i32_0 = arith.constant 0 : i32
    %c0_i32_1 = arith.constant 0 : i32
    return %c0_i32, %c0_i32_0 : i32, i32
  }
  func.func @transform_2(%arg0: i32) -> (i32, i32, i32) {
    %c0_i32 = arith.constant 0 : i32
    %c0_i32_0 = arith.constant 0 : i32
    %c0_i32_1 = arith.constant 0 : i32
    %c0_i32_2 = arith.constant 0 : i32
    return %c0_i32, %c0_i32_0, %c0_i32_1 : i32, i32, i32
  }
  func.func @transform_3(%arg0: i32) -> (i32, i32, i32) {
    %c0_i32 = arith.constant 0 : i32
    %c0_i32_0 = arith.constant 0 : i32
    %c0_i32_1 = arith.constant 0 : i32
    %c0_i32_2 = arith.constant 0 : i32
    return %c0_i32, %c0_i32_0, %c0_i32_1 : i32, i32, i32
  }
}

</mosaic_0001>

<bundles_post_ra>
// kernel: tpu_custom_call.1
= control target key start
LH: loop header
LB: loop body
LE: loop exit
PB: predicated region body
PF: predicated region fallthrough
CT: control target
= control target key end

     0   :  { %9 = vsyncpa [#allocation3], 0  ;;  %s2664_s0 = inlined_call_operand.hbm [shape: f32[32,32], index: 0, kind: input, shape index: {}]   ;;  %s2665_s1 = inlined_call_operand.hbm [shape: f32[376,128], index: 1, kind: input, shape index: {}]   ;;  %s2666_s2 = inlined_call_operand.hbm [shape: f32[2,4,128], index: 2, kind: output, shape index: {0}]   ;;  %s2667_s3 = inlined_call_operand.hbm [shape: f32[2,4,128], index: 3, kind: output, shape index: {1}]  }
   0x1   :  { %10 = vsyncpa [#allocation6], 0 }
   0x2   :  { %11 = vsyncpa [#allocation4], 0 }
   0x3   :  { %12 = vsyncpa [#allocation9], 0  ;;  %s17_s14 = sshll.u32 %s2664_s0, 4  ;;  %s2183_s15 = smov [#allocation2]   ;;  %s18_s14 = int_to_ptr.hbm [resolvable:$true] %s17_s14 }
   0x4   :  { %s19_s16 = sshll.u32 %s2183_s15, 4  ;;  %s30_s19 = sshll.u32 %s2665_s1, 4  ;;  %s20_s16 = int_to_ptr.vmem [resolvable:$true] %s19_s16  ;;  %s31_s19 = int_to_ptr.hbm [resolvable:$true] %s30_s19 }
   0x5   :  { %s2184_s20 = smov 128   ;;  %s2185_s21 = smov 8  }
   0x6   :  { %25 = dma.hbm_to_vmem [thread:$0]  %s18_s14, 512, %s20_s16, [#allocation3], %s2184_s20, %s2184_s20, %s2185_s21  }
   0x7   :  { %s2186_s22 = smov [#allocation5]  }
   0x8   :  { %s32_s23 = sshll.u32 %s2186_s22, 4  ;;  %s33_s23 = int_to_ptr.vmem [resolvable:$true] %s32_s23 }
   0x9   :  { %38 = dma.hbm_to_vmem [thread:$0]  %s31_s19, 6016, %s33_s23, [#allocation6], %s2184_s20, %s2184_s20, %s2185_s21  }
   0xa   :  { %2175 = dma.done.wait [#allocation3], 512  }
   0xb   :  { %2176 = vsyncadd [#allocation3], 4294966784 }
   0xc   :  { %2177 = dma.done.wait [#allocation6], 6016  }
   0xd   :  { %2178 = vsyncadd [#allocation6], 4294961280  ;;  %v54_v0 = vld [vmem:[#allocation5 + $0x18] sm:$0xff]  ;;  %v2220_v1 = vld [vmem:[#allocation5 + $0x40] sm:$0xff]  ;;  %vm57_vm0 = vcmask 261120   ;;  %v2187_v9 = vmov 0.0   ;;  %v207_v47 = vlaneseq }
   0xe   :  { %v53_v2 = vld [vmem:[#allocation5 + $0x10] sm:$0xff]  ;;  %82 = vmatpush.msra.mxu0 %v54_v0  ;;  %156 = vmatpush.msra.mxu2 %v2220_v1  ;;  %v2223_v3 = vld [vmem:[#allocation5 + $0x38] sm:$0xff]  ;;  %v52_v4 = vld [vmem:[#allocation5 + $0x8] sm:$0xff]  ;;  %vm212_vm1 = vcmask 130112   ;;  %vm217_vm2 = vcmask 1041409   ;;  %vm220_vm3 = vcmask 123904  }
   0xf   :  { %v2225_v5 = vld [vmem:[#allocation5 + $0x30] sm:$0xff]  ;;  %v51_v6 = vld [vmem:[#allocation5] sm:$0xff]  ;;  %v2228_v7 = vld [vmem:[#allocation5 + $0x28] sm:$0xff]  ;;  %v2278_v50 = vand.u32 127, %v207_v47  ;;  %s2189_s1 = smov 64   ;;  %s2190_s24 = smov 32  }
  0x10   :  { %83 = vmatpush.msra.mxu0 %v53_v2  ;;  %157 = vmatpush.msra.mxu2 %v2223_v3  ;;  %v2230_v8 = vld [vmem:[#allocation2] sm:$0xff]  ;;  %v2239_v10 = vld [vmem:[#allocation2 + $0x8] sm:$0xff]  ;;  %v2245_v11 = vld [vmem:[#allocation2 + $0x10] sm:$0xff]  ;;  %vm543_vm12 = vcmask 130048   ;;  %s2191_s25 = smov [#allocation7]   ;;  %s1843_s29 = sshll.u32 %s2666_s2, 4  ;;  %s1844_s29 = int_to_ptr.hbm [resolvable:$true] %s1843_s29 }
  0x11   :  { %v2249_v12 = vld [vmem:[#allocation2 + $0x18] sm:$0xff]  ;;  %v2253_v14 = vld [vmem:[#allocation5 + $0x48] ss:$0 sm:$0xff]  ;;  %v1932_v15 = vld [vmem:[#allocation5 + $0x20] ss:$0 sm:$0xff]  ;;  %v2283_v52 = vadd.s32 4294967288, %v2278_v50 }
  0x12   :  { %84 = vmatpush.msra.mxu0 %v52_v4  ;;  %158 = vmatpush.msra.mxu2 %v2225_v5  ;;  %v138_v18 = vld [vmem:[#allocation5 + $0x58] sm:$0x1]  ;;  %v2262_v28 = vld [vmem:[#allocation5 + $0x50] ss:$0 sm:$0xff]  ;;  %v2188_v4 = vmov 0   ;;  %s1841_s26 = sshll.u32 %s2191_s25, 4  ;;  %s1842_s26 = int_to_ptr.vmem [resolvable:$true] %s1841_s26 }
  0x13   :  { %1916 = vpush %v138_v18  ;;  %1931 = vset.pattern.permute.xlu1 %v2188_v4  ;;  %1930 = vset.pattern.permute.xlu0 %v2188_v4  ;;  %s2192_s30 = smov 4   ;;  %s2193_s4 = smov [#allocation8]  }
  0x14   :  { %85 = vmatpush.msra.mxu0 %v51_v6  ;;  %159 = vmatpush.msra.mxu2 %v2228_v7  ;;  %s1854_s5 = sshll.u32 %s2193_s4, 4  ;;  %s1856_s8 = sshll.u32 %s2667_s3, 4  ;;  %s1855_s5 = int_to_ptr.vmem [resolvable:$true] %s1854_s5  ;;  %s1857_s8 = int_to_ptr.hbm [resolvable:$true] %s1856_s8 }
  0x15   :  { %1875 = vmatmul.msk.f32.vlgmr.msra.gmra.mxu0 %vm57_vm0, %v2230_v8  ;;  %160 = vmatmul.f32.vlgmr.msra.gmra.mxu2 %v2187_v9 }
  0x16   :  { %589 = vmatpush.msrb.mxu0 %v2220_v1  ;;  %1929 = vset.pattern.permute.xlu2 %v2188_v4 }
  0x18   :  { %590 = vmatpush.msrb.mxu0 %v2223_v3 }
  0x1a   :  { %591 = vmatpush.msrb.mxu0 %v2225_v5 }
  0x1c   :  { %592 = vmatpush.msrb.mxu0 %v2228_v7 }
  0x1d   :  { %1876 = vmatmul.msk.f32.gmra.mxu0 %vm57_vm0, %v2239_v10 }
  0x25   :  { %1877 = vmatmul.msk.f32.gmra.mxu0 %vm57_vm0, %v2245_v11 }
  0x2d   :  { %1878 = vmatmul.msk.f32.gmra.mxu0 %vm57_vm0, %v2249_v12 }
  0x44   :  { %s1917_s0 = spop %1916 }
  0x45   :  { %v2280_v51 = vstv %s1917_s0 }
  0x92   :  { %v87_v13 = vpop.f32.mrf.mxu0 }
  0x93   :  { %v2256_v20 = vadd.f32 %v1932_v15, %v87_v13 }
  0x98   :  { %v161_v16 = vpop.f32.mrf.mxu2 }
  0x99   :  { %v162_v17 = vadd.f32 %v2253_v14, %v161_v16 }
  0x9a   :  { %v90_v19 = vpop.f32.mrf.mxu0 }
  0x9b   :  { %v166_v21 = vperm.slane %v162_v17, 0  ;;  %v2258_v22 = vadd.f32 %v1932_v15, %v90_v19  ;;  %v165_v23 = vrot.slane %v162_v17, 1 }
  0x9d   :  { %v170_v24 = vadd.f32 %v166_v21, %v2256_v20  ;;  %v171_v25 = vadd.f32 %v166_v21, %v2258_v22  ;;  %v167_v26 = vperm.slane %v165_v23, 0 }
  0x9f   :  { %1952 = vtanh.f32 %v170_v24 }
  0xa0   :  { %1954 = vtanh.f32 %v171_v25 }
  0xa2   :  { %v93_v27 = vpop.f32.mrf.mxu0 }
  0xa3   :  { %v2264_v29 = vadd.f32 %v1932_v15, %v93_v27 }
  0xa5   :  { %v1953_v30 = vpop.eup %1952  ;;  %v172_v31 = vadd.f32 %v167_v26, %v2264_v29 }
  0xa6   :  { %v179_v32 = vmul.f32 %v1953_v30, %v2262_v28  ;;  %v1955_v34 = vpop.eup %1954 }
  0xa7   :  { %1956 = vtanh.f32 %v172_v31  ;;  %v180_v37 = vmul.f32 %v1955_v34, %v2262_v28  ;;  %v100_v34 = vld [vmem:[#allocation5 + $0x68] sm:$0xff] }
  0xa8   :  { %v183_v33 = vsel %vm57_vm0, %v179_v32, 0.0  ;;  %v102_v32 = vld [vmem:[#allocation5 + $0x78] sm:$0xff] }
  0xa9   :  { %184 = vadd.xlane.f32.xlu0 %v183_v33  ;;  %v186_v42 = vsel %vm57_vm0, %v180_v37, 0.0  ;;  %v101_v33 = vld [vmem:[#allocation5 + $0x70] sm:$0xff]  ;;  %115 = vmatpush.msra.mxu1 %v102_v32 }
  0xaa   :  { %v96_v35 = vpop.f32.mrf.mxu0 }
  0xab   :  { %v2269_v36 = vadd.f32 %v1932_v15, %v96_v35  ;;  %116 = vmatpush.msra.mxu1 %v101_v33  ;;  %v99_v35 = vld [vmem:[#allocation5 + $0x60] sm:$0xff] }
  0xad   :  { %v1957_v38 = vpop.eup %1956  ;;  %v173_v39 = vadd.f32 %v167_v26, %v2269_v36  ;;  %117 = vmatpush.msra.mxu1 %v100_v34 }
  0xae   :  { %v181_v40 = vmul.f32 %v1957_v38, %v2262_v28 }
  0xaf   :  { %1958 = vtanh.f32 %v173_v39  ;;  %118 = vmatpush.msra.mxu1 %v99_v35 }
  0xb0   :  { %v189_v41 = vsel %vm57_vm0, %v181_v40, 0.0  ;;  %1879 = vmatmul.msk.f32.vlgmr.msra.gmra.mxu1 %vm57_vm0, %v2230_v8 }
  0xb1   :  { %190 = vadd.xlane.f32.xlu1 %v189_v41  ;;  %187 = vadd.xlane.f32.xlu0 %v186_v42 }
  0xb5   :  { %v1959_v43 = vpop.eup %1958 }
  0xb6   :  { %v182_v44 = vmul.f32 %v1959_v43, %v2262_v28 }
  0xb8   :  { %v192_v45 = vsel %vm57_vm0, %v182_v44, 0.0  ;;  %1880 = vmatmul.msk.f32.gmra.mxu1 %vm57_vm0, %v2239_v10 }
  0xb9   :  { %193 = vadd.xlane.f32.xlu1 %v192_v45 }
  0xc0   :  { %1881 = vmatmul.msk.f32.gmra.mxu1 %vm57_vm0, %v2245_v11 }
  0xc8   :  { %1882 = vmatmul.msk.f32.gmra.mxu1 %vm57_vm0, %v2249_v12 }
 0x11c   :  { %v185_v46 = vpop.xlane.xlu0 %184 }
 0x11d   :  { %v199_v54 = vadd.f32 %v2280_v51, %v185_v46 }
 0x11f   :  { %v209_v59 = vperm.slane %v199_v54, %v2278_v50 }
 0x124   :  { %v191_v48 = vpop.xlane.xlu1 %190  ;;  %v188_v49 = vpop.xlane.xlu0 %187 }
 0x125   :  { %v200_v53 = vadd.f32 %v2280_v51, %v188_v49  ;;  %v201_v55 = vadd.f32 %v2280_v51, %v191_v48 }
 0x127   :  { %v211_v57 = vperm.slane %v200_v53, %v2283_v52  ;;  %v214_v60 = vperm.slane %v201_v55, %v2278_v50 }
 0x129   :  { %v213_v62 = vsel %vm212_vm1, %v211_v57, %v209_v59 }
 0x12c   :  { %v194_v56 = vpop.xlane.xlu1 %193 }
 0x12d   :  { %v202_v58 = vadd.f32 %v2280_v51, %v194_v56 }
 0x12f   :  { %v215_v61 = vperm.slane %v202_v58, %v2283_v52 }
 0x131   :  { %v216_v63 = vsel %vm212_vm1, %v215_v61, %v214_v60 }
 0x132   :  { %v218_v0 = vsel %vm217_vm2, %v216_v63, %v213_v62 }
 0x133   :  { %v221_v2 = vsel %vm220_vm3, %v218_v0, -inf }
 0x134   :  { %222 = vmax.xlane.f32.xlu2 %v221_v2  ;;  %v2313_v2 = vpop.f32.mrf.mxu1 }
 0x13c   :  { %v2315_v4 = vpop.f32.mrf.mxu1 }
 0x1a7   :  { %v223_v6 = vpop.xlane.xlu2 %222 }
 0x1a8   :  { %v225_v13 = vperm.slane %v223_v6, 0  ;;  %v226_v15 = vperm.slane %v223_v6, 1  ;;  %v2317_v6 = vld [vmem:[#allocation5 + $0xc0] sm:$0xff] }
 0x1a9   :  { %356 = vmatpush.msra.mxu3 %v2317_v6  ;;  %777 = vmatpush.msrb.mxu1 %v2317_v6 }
 0x1aa   :  { %v229_v16 = vsub.f32 %v199_v54, %v225_v13  ;;  %v230_v17 = vsub.f32 %v200_v53, %v225_v13  ;;  %v231_v18 = vsub.f32 %v201_v55, %v226_v15  ;;  %v232_v24 = vsub.f32 %v202_v58, %v226_v15  ;;  %v2321_v13 = vld [vmem:[#allocation5 + $0xb8] sm:$0xff]  ;;  %v2325_v15 = vld [vmem:[#allocation5 + $0xb0] sm:$0xff] }
 0x1ab   :  { %357 = vmatpush.msra.mxu3 %v2321_v13  ;;  %778 = vmatpush.msrb.mxu1 %v2321_v13 }
 0x1ac   :  { %v233_v19 = vmul.f32 1.442695, %v229_v16  ;;  %v235_v21 = vmul.f32 1.442695, %v230_v17  ;;  %v237_v23 = vmul.f32 1.442695, %v231_v18  ;;  %v2329_v16 = vpop.f32.mrf.mxu1 }
 0x1ad   :  { %v239_v25 = vmul.f32 1.442695, %v232_v24  ;;  %358 = vmatpush.msra.mxu3 %v2325_v15  ;;  %779 = vmatpush.msrb.mxu1 %v2325_v15  ;;  %v2331_v17 = vld [vmem:[#allocation5 + $0xa8] sm:$0xff]  ;;  %v2336_v18 = vld [vmem:[#allocation5 + $0xa0] sm:$0xff] }
 0x1ae   :  { %1960 = vpow2.f32 %v233_v19  ;;  %v2338_v19 = vld [vmem:[#allocation5 + $0x108] sm:$0xff]  ;;  %382 = vmatpush.msrb.mxu2 %v2336_v18  ;;  %v2344_v24 = vld [vmem:[#allocation5 + $0x100] sm:$0xff] }
 0x1af   :  { %1962 = vpow2.f32 %v235_v21  ;;  %359 = vmatpush.msra.mxu3 %v2331_v17  ;;  %780 = vmatpush.msrb.mxu1 %v2331_v17 }
 0x1b0   :  { %1964 = vpow2.f32 %v237_v23  ;;  %360 = vmatmul.f32.vlgmr.msra.gmra.mxu3 %v2187_v9  ;;  %v2342_v23 = vld [vmem:[#allocation5 + $0x98] sm:$0xff] }
 0x1b1   :  { %1966 = vpow2.f32 %v239_v25  ;;  %450 = vmatpush.msrb.mxu3 %v2338_v19  ;;  %v2346_v25 = vld [vmem:[#allocation5 + $0x90] sm:$0xff]  ;;  %383 = vmatpush.msrb.mxu2 %v2342_v23 }
 0x1b3   :  { %451 = vmatpush.msrb.mxu3 %v2344_v24  ;;  %384 = vmatpush.msrb.mxu2 %v2346_v25 }
 0x1b4   :  { %v1961_v26 = vpop.eup %1960 }
 0x1b5   :  { %v1963_v27 = vpop.eup %1962  ;;  %246 = vperm.xlu2 %1929, %v1961_v26  }
 0x1b6   :  { %v1965_v30 = vpop.eup %1964  ;;  %249 = vperm.xlu0 %1930, %v1963_v27  }
 0x1b7   :  { %252 = vperm.xlu1 %1931, %v1965_v30   ;;  %v1967_v31 = vpop.eup %1966 }
 0x1bd   :  { %255 = vperm.xlu2 %1929, %v1967_v31  }
 0x20f   :  { %v247_v37 = vpop.permute.xlu2 %246 }
 0x210   :  { %v257_v40 = vperm.slane %v247_v37, %v2278_v50 }
 0x217   :  { %v256_v38 = vpop.permute.xlu2 %255 }
 0x218   :  { %v261_v43 = vperm.slane %v256_v38, %v2283_v52 }
 0x228   :  { %v250_v39 = vpop.permute.xlu0 %249 }
 0x229   :  { %v253_v41 = vpop.permute.xlu1 %252  ;;  %v258_v42 = vperm.slane %v250_v39, %v2283_v52 }
 0x22a   :  { %v260_v44 = vperm.slane %v253_v41, %v2278_v50 }
 0x22b   :  { %v259_v8 = vsel %vm212_vm1, %v258_v42, %v257_v40 }
 0x22c   :  { %v262_v45 = vsel %vm212_vm1, %v261_v43, %v260_v44 }
 0x22d   :  { %v263_v10 = vsel %vm217_vm2, %v262_v45, %v259_v8 }
 0x22e   :  { %v265_v46 = vsel %vm220_vm3, %v263_v10, 0.0 }
 0x22f   :  { %266 = vadd.xlane.f32.xlu2 %v265_v46 }
 0x2a2   :  { %v267_v11 = vpop.xlane.xlu2 %266 }
 0x2a3   :  { %1968 = vrcp.f32 %v267_v11  ;;  %v279_v53 = vand.u32 2147483648, %v267_v11  ;;  %v277_v55 = vand.u32 2147483647, %v267_v11  ;;  %vm273_vm5 = vweird.f32 %v267_v11 }
 0x2a5   :  { %v280_v57 = vor.u32 1.1754944e-38, %v279_v53  ;;  %vm278_vm7 = vcmp.eq.f32.partialorder %v277_v55, 8.507059e+37  ;;  %v2370_v55 = vld [vmem:[#allocation5 + $0x80] ss:$0 sm:$0xff] }
 0x2a9   :  { %v1969_v47 = vpop.eup %1968 }
 0x2aa   :  { %v269_v48 = vmul.f32 %v1969_v47, %v267_v11  ;;  %vm274_vm4 = vweird.f32 %v1969_v47 }
 0x2ab   :  { %vm275_vm6 = vmor %vm273_vm5, %vm274_vm4 }
 0x2ac   :  { %v270_v49 = vsub.f32 1.0, %v269_v48 }
 0x2ae   :  { %v271_v54 = vmul.f32 %v1969_v47, %v270_v49 }
 0x2b0   :  { %v272_v56 = vadd.f32 %v1969_v47, %v271_v54 }
 0x2b2   :  { %v276_v58 = vsel %vm275_vm6, %v1969_v47, %v272_v56 }
 0x2b3   :  { %v281_v59 = vsel %vm278_vm7, %v280_v57, %v276_v58 }
 0x2b4   :  { %v284_v60 = vperm.slane %v281_v59, 1  ;;  %v283_v61 = vperm.slane %v281_v59, 0 }
 0x2b6   :  { %v289_v62 = vmul.f32 %v1965_v30, %v284_v60  ;;  %v287_v12 = vmul.f32 %v1961_v26, %v283_v61  ;;  %v290_v63 = vmul.f32 %v1967_v31, %v284_v60  ;;  %v288_v0 = vmul.f32 %v1963_v27, %v283_v61  ;;  %v2350_v26 = vld [vmem:[#allocation5 + $0xf8] sm:$0xff]  ;;  %v2352_v27 = vld [vmem:[#allocation5 + $0x88] sm:$0xff]  ;;  %v2354_v30 = vld [vmem:[#allocation5 + $0xf0] sm:$0xff]  ;;  %v2360_v31 = vpop.f32.mrf.mxu1 }
 0x2b7   :  { %452 = vmatpush.msrb.mxu3 %v2350_v26  ;;  %385 = vmatpush.msrb.mxu2 %v2352_v27 }
 0x2b8   :  { %303 = vperm.xlu1 %1931, %v289_v62   ;;  %293 = vperm.xlu0 %1930, %v287_v12   ;;  %v1936_v12 = vld [vmem:[#allocation5 + $0xc8] ss:$0 sm:$0xff] }
 0x2b9   :  { %453 = vmatpush.msrb.mxu3 %v2354_v30 }
 0x2c0   :  { %308 = vperm.xlu1 %1931, %v290_v63   ;;  %v361_v63 = vpop.f32.mrf.mxu3 }
 0x2c8   :  { %298 = vperm.xlu1 %1931, %v288_v0  }
 0x32a   :  { %v304_v21 = vpop.permute.xlu1 %303  ;;  %v294_v38 = vpop.permute.xlu0 %293 }
 0x32b   :  { %v313_v32 = vmul.f32 %v304_v21, %v2329_v16  ;;  %v311_v41 = vmul.f32 %v294_v38, %v2313_v2 }
 0x32d   :  { %v324_v35 = vsel %vm57_vm0, %v313_v32, 0.0  ;;  %v315_v45 = vsel %vm57_vm0, %v311_v41, 0.0 }
 0x332   :  { %v309_v33 = vpop.permute.xlu1 %308 }
 0x333   :  { %v314_v34 = vmul.f32 %v309_v33, %v2360_v31 }
 0x335   :  { %v325_v37 = vsel %vm57_vm0, %v314_v34, 0.0 }
 0x336   :  { %v326_v39 = vadd.f32 %v325_v37, %v324_v35 }
 0x338   :  { %v327_v40 = vrot.slane %v326_v39, 4 }
 0x33a   :  { %v328_v42 = vadd.f32 %v327_v40, %v326_v39  ;;  %v299_v43 = vpop.permute.xlu1 %298 }
 0x33b   :  { %v312_v44 = vmul.f32 %v299_v43, %v2315_v4 }
 0x33c   :  { %v329_v8 = vrot.slane %v328_v42, 2 }
 0x33d   :  { %v316_v10 = vsel %vm57_vm0, %v312_v44, 0.0 }
 0x33e   :  { %v330_v46 = vadd.f32 %v329_v8, %v328_v42  ;;  %v317_v11 = vadd.f32 %v316_v10, %v315_v45 }
 0x340   :  { %v331_v47 = vrot.slane %v330_v46, 1  ;;  %v318_v48 = vrot.slane %v317_v11, 4 }
 0x342   :  { %v319_v49 = vadd.f32 %v318_v48, %v317_v11  ;;  %v332_v53 = vadd.f32 %v331_v47, %v330_v46 }
 0x344   :  { %v320_v54 = vrot.slane %v319_v49, 2  ;;  %v335_v58 = vadd.f32 %v2370_v55, %v332_v53 }
 0x346   :  { %v321_v56 = vadd.f32 %v320_v54, %v319_v49  ;;  %v366_v61 = vrot.slane %v335_v58, 7  ;;  %v433_v54 = vld [vmem:[#allocation5 + $0xe8] sm:$0xff] }
 0x347   :  { %475 = vmatpush.msra.mxu2 %v433_v54  ;;  %v493_v58 = vld [vmem:[#allocation5 + $0x148] sm:$0xff]  ;;  %896 = vmatpush.msra.mxu0 %v433_v54 }
 0x348   :  { %v322_v57 = vrot.slane %v321_v56, 1 }
 0x34a   :  { %v323_v59 = vadd.f32 %v322_v57, %v321_v56  ;;  %v494_v56 = vld [vmem:[#allocation5 + $0x150] sm:$0xff]  ;;  %v432_v57 = vld [vmem:[#allocation5 + $0xe0] sm:$0xff] }
 0x34b   :  { %507 = vmatpush.msra.mxu3 %v494_v56  ;;  %928 = vmatpush.msra.mxu1 %v494_v56 }
 0x34c   :  { %v334_v60 = vadd.f32 %v2370_v55, %v323_v59  ;;  %v2383_v59 = vld [vmem:[#allocation5 + $0xd8] sm:$0xff]  ;;  %476 = vmatpush.msra.mxu2 %v432_v57  ;;  %897 = vmatpush.msra.mxu0 %v432_v57 }
 0x34d   :  { %508 = vmatpush.msra.mxu3 %v493_v58  ;;  %929 = vmatpush.msra.mxu1 %v493_v58 }
 0x34e   :  { %v367_v62 = vsel %vm217_vm2, %v366_v61, %v334_v60  ;;  %v2385_v60 = vld [vmem:[#allocation5 + $0x140] sm:$0xff]  ;;  %v2387_v61 = vld [vmem:[#allocation5 + $0xd0] sm:$0xff]  ;;  %477 = vmatpush.msra.mxu2 %v2383_v59  ;;  %898 = vmatpush.msra.mxu0 %v2383_v59 }
 0x34f   :  { %1883 = vmatmul.msk.f32.vlgmr.msrb.gmra.mxu2 %vm57_vm0, %v367_v62  ;;  %1885 = vmatmul.msk.f32.vlgmr.msrb.gmra.mxu3 %vm57_vm0, %v367_v62  ;;  %v2389_v62 = vld [vmem:[#allocation5 + $0x138] sm:$0xff] }
 0x350   :  { %509 = vmatpush.msra.mxu3 %v2385_v60  ;;  %930 = vmatpush.msra.mxu1 %v2385_v60 }
 0x351   :  { %478 = vmatpush.msra.mxu2 %v2387_v61  ;;  %899 = vmatpush.msra.mxu0 %v2387_v61 }
 0x352   :  { %510 = vmatpush.msra.mxu3 %v2389_v62  ;;  %931 = vmatpush.msra.mxu1 %v2389_v62 }
 0x3d2   :  { %v387_v0 = vpop.f32.mrf.mxu2 }
 0x3d3   :  { %v388_v21 = vadd.f32 %v387_v0, %v361_v63  ;;  %v2400_v0 = vld [vmem:[#allocation5 + $0x130] sm:$0xff] }
 0x3d4   :  { %527 = vmatpush.msrb.mxu2 %v2400_v0 }
 0x3d5   :  { %v392_v32 = vadd.f32 %v1936_v12, %v388_v21  ;;  %v2402_v21 = vld [vmem:[#allocation5 + $0x128] sm:$0xff] }
 0x3d6   :  { %528 = vmatpush.msrb.mxu2 %v2402_v21 }
 0x3d7   :  { %1970 = vtanh.f32 %v392_v32  ;;  %v1884_v34 = vmul.f32 -1.442695, %v392_v32  ;;  %v2405_v32 = vld [vmem:[#allocation5 + $0x120] sm:$0xff] }
 0x3d8   :  { %529 = vmatpush.msrb.mxu2 %v2405_v32 }
 0x3d9   :  { %1972 = vpow2.f32 %v1884_v34 }
 0x3dd   :  { %v1971_v33 = vpop.eup %1970 }
 0x3de   :  { %415 = vrot.lane.b32.xlu0 %v1971_v33, %s2189_s1  ;;  %v2408_v33 = vld [vmem:[#allocation5 + $0x118] sm:$0xff] }
 0x3df   :  { %v1973_v35 = vpop.eup %1972  ;;  %530 = vmatpush.msrb.mxu2 %v2408_v33 }
 0x3e0   :  { %v396_v37 = vadd.f32 1.0, %v1973_v35 }
 0x3e2   :  { %1974 = vrcp.f32 %v396_v37  ;;  %v408_v43 = vand.u32 2147483648, %v396_v37  ;;  %vm402_vm9 = vweird.f32 %v396_v37  ;;  %v406_v44 = vand.u32 2147483647, %v396_v37 }
 0x3e4   :  { %v409_v45 = vor.u32 1.1754944e-38, %v408_v43  ;;  %vm407_vm11 = vcmp.eq.f32.partialorder %v406_v44, 8.507059e+37 }
 0x3e8   :  { %v1975_v38 = vpop.eup %1974 }
 0x3e9   :  { %v398_v39 = vmul.f32 %v1975_v38, %v396_v37  ;;  %vm403_vm8 = vweird.f32 %v1975_v38 }
 0x3ea   :  { %vm404_vm10 = vmor %vm402_vm9, %vm403_vm8 }
 0x3eb   :  { %v399_v40 = vsub.f32 1.0, %v398_v39 }
 0x3ed   :  { %v400_v41 = vmul.f32 %v1975_v38, %v399_v40 }
 0x3ef   :  { %v401_v42 = vadd.f32 %v1975_v38, %v400_v41 }
 0x3f1   :  { %v405_v8 = vsel %vm404_vm10, %v1975_v38, %v401_v42 }
 0x3f2   :  { %v410_v46 = vsel %vm407_vm11, %v409_v45, %v405_v8 }
 0x3f3   :  { %v413_v47 = vmul.f32 0.0, %v410_v46 }
 0x450   :  { %v416_v10 = vpop.permute.xlu0 %415 }
 0x451   :  { %v418_v11 = vmul.f32 %v416_v10, %v410_v46 }
 0x453   :  { %420 = vrot.lane.b32.xlu1 %v418_v11, %s2190_s24 }
 0x4c5   :  { %v421_v48 = vpop.permute.xlu1 %420 }
 0x4c6   :  { %v2379_v49 = vadd.f32 %v421_v48, %v413_v47 }
 0x4c8   :  { %1976 = vtanh.f32 %v2379_v49 }
 0x4ce   :  { %v1977_v53 = vpop.eup %1976 }
 0x4cf   :  { %426 = vrot.lane.b32.xlu0 %v1977_v53, %s2189_s1 }
 0x541   :  { %v427_v12 = vpop.permute.xlu0 %426 }
 0x542   :  { %v429_v63 = vmul.f32 %v427_v12, %v410_v46 }
 0x544   :  { %459 = vrot.lane.b32.xlu1 %v429_v63, %s2190_s24 }
 0x5b6   :  { %v2412_v34 = vpop.permute.xlu1 %459 }
 0x5b7   :  { %1886 = vmatmul.msk.f32.vlgmr.msra.gmra.mxu2 %vm57_vm0, %v2412_v34  ;;  %1887 = vmatmul.msk.f32.vlgmr.msra.gmra.mxu3 %vm57_vm0, %v2412_v34 }
 0x5b8   :  { %1889 = vmatmul.msk.f32.vlgmr.msrb.gmra.mxu0 %vm57_vm0, %v2412_v34  ;;  %1890 = vmatmul.msk.f32.vlgmr.msrb.gmra.mxu1 %vm57_vm0, %v2412_v34 }
 0x5b9   :  { %803 = vmatpush.msra.mxu2 %v2336_v18  ;;  %1009 = vmatpush.msrb.mxu0 %v2220_v1  ;;  %v2439_v1 = vld [vmem:[#allocation5 + $0x168] sm:$0xff] }
 0x5ba   :  { %1197 = vmatpush.msrb.mxu1 %v2317_v6  ;;  %561 = vmatpush.msrb.mxu3 %v2439_v1 }
 0x5bb   :  { %804 = vmatpush.msra.mxu2 %v2342_v23  ;;  %1010 = vmatpush.msrb.mxu0 %v2223_v3  ;;  %v2441_v3 = vld [vmem:[#allocation5 + $0x160] sm:$0xff] }
 0x5bc   :  { %1198 = vmatpush.msrb.mxu1 %v2321_v13  ;;  %562 = vmatpush.msrb.mxu3 %v2441_v3  ;;  %v1937_v13 = vld [vmem:[#allocation5 + $0x110] ss:$0 sm:$0xff] }
 0x5bd   :  { %805 = vmatpush.msra.mxu2 %v2346_v25  ;;  %1011 = vmatpush.msrb.mxu0 %v2225_v5 }
 0x5be   :  { %1199 = vmatpush.msrb.mxu1 %v2325_v15  ;;  %871 = vmatpush.msra.mxu3 %v2338_v19  ;;  %v455_v15 = vpop.f32.mrf.mxu3 }
 0x5bf   :  { %531 = vmatmul.f32.vlgmr.msrb.gmra.mxu2 %v2187_v9  ;;  %1012 = vmatpush.msrb.mxu0 %v2228_v7 }
 0x5c0   :  { %806 = vmatpush.msra.mxu2 %v2352_v27  ;;  %1200 = vmatpush.msrb.mxu1 %v2331_v17 }
 0x5c1   :  { %872 = vmatpush.msra.mxu3 %v2344_v24 }
 0x5c2   :  { %948 = vmatpush.msrb.mxu2 %v2400_v0 }
 0x5c3   :  { %873 = vmatpush.msra.mxu3 %v2350_v26 }
 0x5c4   :  { %949 = vmatpush.msrb.mxu2 %v2402_v21 }
 0x5c5   :  { %874 = vmatpush.msra.mxu3 %v2354_v30 }
 0x5c6   :  { %950 = vmatpush.msrb.mxu2 %v2405_v32 }
 0x5c8   :  { %951 = vmatpush.msrb.mxu2 %v2408_v33 }
 0x635   :  { %v594_v5 = vpop.f32.mrf.mxu0 }
 0x636   :  { %v595_v7 = vadd.f32 %v2253_v14, %v594_v5  ;;  %v1938_v14 = vld [vmem:[#allocation5 + $0x158] ss:$0 sm:$0xff] }
 0x638   :  { %v598_v9 = vrot.slane %v595_v7, 1  ;;  %v599_v6 = vperm.slane %v595_v7, 0 }
 0x63a   :  { %v600_v17 = vperm.slane %v598_v9, 0  ;;  %v603_v18 = vadd.f32 %v599_v6, %v2256_v20  ;;  %v604_v23 = vadd.f32 %v599_v6, %v2258_v22  ;;  %v480_v25 = vpop.f32.mrf.mxu2  ;;  %v512_v35 = vpop.f32.mrf.mxu3 }
 0x63b   :  { %v481_v19 = vadd.f32 %v480_v25, %v455_v15 }
 0x63c   :  { %v605_v24 = vadd.f32 %v600_v17, %v2264_v29  ;;  %1978 = vtanh.f32 %v603_v18  ;;  %v606_v27 = vadd.f32 %v600_v17, %v2269_v36 }
 0x63d   :  { %1980 = vtanh.f32 %v604_v23  ;;  %v485_v26 = vadd.f32 %v1937_v13, %v481_v19  ;;  %v1939_v19 = vld [vmem:[#allocation5 + $0x170] ss:$0 sm:$0xff] }
 0x63e   :  { %1982 = vtanh.f32 %v605_v24 }
 0x63f   :  { %1984 = vtanh.f32 %v485_v26 }
 0x640   :  { %1986 = vtanh.f32 %v606_v27 }
 0x642   :  { %v1979_v30 = vpop.eup %1978  ;;  %v532_v37 = vpop.f32.mrf.mxu2 }
 0x643   :  { %v1981_v38 = vpop.eup %1980  ;;  %v533_v39 = vadd.f32 %v532_v37, %v512_v35  ;;  %v611_v40 = vmul.f32 %v1979_v30, %v2262_v28 }
 0x644   :  { %v1983_v41 = vpop.eup %1982  ;;  %v612_v42 = vmul.f32 %v1981_v38, %v2262_v28 }
 0x645   :  { %v537_v43 = vadd.f32 %v1938_v14, %v533_v39  ;;  %v615_v44 = vsel %vm57_vm0, %v611_v40, 0.0  ;;  %v613_v8 = vmul.f32 %v1983_v41, %v2262_v28  ;;  %v1985_v45 = vpop.eup %1984 }
 0x646   :  { %v618_v10 = vsel %vm57_vm0, %v612_v42, 0.0  ;;  %616 = vadd.xlane.f32.xlu0 %v615_v44  ;;  %v568_v46 = vrot.slane %v1985_v45, 1  ;;  %570 = vst [vmem:[#allocation7] sm:$0x1] %v1985_v45  ;;  %v1987_v47 = vpop.eup %1986 }
 0x647   :  { %1988 = vtanh.f32 %v537_v43  ;;  %619 = vadd.xlane.f32.xlu1 %v618_v10  ;;  %v621_v11 = vsel %vm57_vm0, %v613_v8, 0.0  ;;  %v614_v48 = vmul.f32 %v1987_v47, %v2262_v28 }
 0x648   :  { %622 = vadd.xlane.f32.xlu2 %v621_v11  ;;  %571 = vst [vmem:[#allocation7 + $0x4] sm:$0x1] %v568_v46 }
 0x649   :  { %v624_v54 = vsel %vm57_vm0, %v614_v48, 0.0 }
 0x64d   :  { %v1989_v53 = vpop.eup %1988 }
 0x64e   :  { %1888 = vmatmul.msk.f32.vlgmr.msrb.gmra.mxu3 %vm543_vm12, %v1989_v53 }
 0x64f   :  { %981 = vmatpush.msrb.mxu3 %v2439_v1 }
 0x650   :  { %625 = vadd.xlane.f32.xlu2 %v624_v54 }
 0x651   :  { %982 = vmatpush.msrb.mxu3 %v2441_v3 }
 0x6b9   :  { %v617_v58 = vpop.xlane.xlu0 %616 }
 0x6ba   :  { %v620_v57 = vpop.xlane.xlu1 %619  ;;  %v627_v63 = vadd.f32 %v617_v58, %v2280_v51 }
 0x6bb   :  { %v623_v56 = vpop.xlane.xlu2 %622  ;;  %v628_v12 = vadd.f32 %v620_v57, %v2280_v51 }
 0x6bc   :  { %v629_v5 = vadd.f32 %v623_v56, %v2280_v51  ;;  %v635_v9 = vperm.slane %v627_v63, %v2278_v50 }
 0x6bd   :  { %v636_v7 = vperm.slane %v628_v12, %v2283_v52 }
 0x6be   :  { %v638_v13 = vperm.slane %v629_v5, %v2278_v50 }
 0x6bf   :  { %v637_v17 = vsel %vm212_vm1, %v636_v7, %v635_v9 }
 0x6c3   :  { %v626_v28 = vpop.xlane.xlu2 %625 }
 0x6c4   :  { %v630_v6 = vadd.f32 %v626_v28, %v2280_v51 }
 0x6c6   :  { %v639_v15 = vperm.slane %v630_v6, %v2283_v52 }
 0x6c8   :  { %v640_v18 = vsel %vm212_vm1, %v639_v15, %v638_v13 }
 0x6c9   :  { %v641_v23 = vsel %vm217_vm2, %v640_v18, %v637_v17 }
 0x6ca   :  { %v643_v25 = vsel %vm220_vm3, %v641_v23, -inf }
 0x6cb   :  { %644 = vmax.xlane.f32.xlu2 %v643_v25 }
 0x6d1   :  { %v564_v24 = vpop.f32.mrf.mxu3 }
 0x6d2   :  { %v565_v26 = vadd.f32 %v1939_v19, %v564_v24 }
 0x6d4   :  { %v573_v27 = vrot.slane %v565_v26, 1  ;;  %575 = vst [vmem:[#allocation8] sm:$0x1] %v565_v26 }
 0x6d6   :  { %576 = vst [vmem:[#allocation8 + $0x4] sm:$0x1] %v573_v27 }
 0x73e   :  { %v645_v14 = vpop.xlane.xlu2 %644 }
 0x73f   :  { %v647_v30 = vperm.slane %v645_v14, 0  ;;  %v648_v35 = vperm.slane %v645_v14, 1 }
 0x741   :  { %v651_v37 = vsub.f32 %v627_v63, %v647_v30  ;;  %v652_v38 = vsub.f32 %v628_v12, %v647_v30  ;;  %v653_v39 = vsub.f32 %v629_v5, %v648_v35  ;;  %v654_v43 = vsub.f32 %v630_v6, %v648_v35 }
 0x743   :  { %v655_v40 = vmul.f32 1.442695, %v651_v37  ;;  %v657_v41 = vmul.f32 1.442695, %v652_v38  ;;  %v659_v42 = vmul.f32 1.442695, %v653_v39 }
 0x744   :  { %v661_v44 = vmul.f32 1.442695, %v654_v43 }
 0x745   :  { %1990 = vpow2.f32 %v655_v40 }
 0x746   :  { %1992 = vpow2.f32 %v657_v41 }
 0x747   :  { %1994 = vpow2.f32 %v659_v42 }
 0x748   :  { %1996 = vpow2.f32 %v661_v44 }
 0x74b   :  { %v1991_v8 = vpop.eup %1990 }
 0x74c   :  { %v1993_v45 = vpop.eup %1992  ;;  %668 = vperm.xlu2 %1929, %v1991_v8  }
 0x74d   :  { %v1995_v10 = vpop.eup %1994  ;;  %671 = vperm.xlu0 %1930, %v1993_v45  }
 0x74e   :  { %674 = vperm.xlu1 %1931, %v1995_v10   ;;  %v1997_v46 = vpop.eup %1996 }
 0x754   :  { %677 = vperm.xlu2 %1929, %v1997_v46  }
 0x7a6   :  { %v669_v11 = vpop.permute.xlu2 %668 }
 0x7a7   :  { %v679_v53 = vperm.slane %v669_v11, %v2278_v50 }
 0x7ae   :  { %v678_v47 = vpop.permute.xlu2 %677 }
 0x7af   :  { %v683_v57 = vperm.slane %v678_v47, %v2283_v52 }
 0x7bf   :  { %v672_v48 = vpop.permute.xlu0 %671 }
 0x7c0   :  { %v675_v54 = vpop.permute.xlu1 %674  ;;  %v680_v56 = vperm.slane %v672_v48, %v2283_v52 }
 0x7c1   :  { %v682_v58 = vperm.slane %v675_v54, %v2278_v50 }
 0x7c2   :  { %v681_v12 = vsel %vm212_vm1, %v680_v56, %v679_v53 }
 0x7c3   :  { %v684_v63 = vsel %vm212_vm1, %v683_v57, %v682_v58 }
 0x7c4   :  { %v685_v5 = vsel %vm217_vm2, %v684_v63, %v681_v12 }
 0x7c5   :  { %v687_v28 = vsel %vm220_vm3, %v685_v5, 0.0 }
 0x7c6   :  { %688 = vadd.xlane.f32.xlu2 %v687_v28 }
 0x839   :  { %v689_v7 = vpop.xlane.xlu2 %688 }
 0x83a   :  { %1998 = vrcp.f32 %v689_v7  ;;  %v701_v15 = vand.u32 2147483648, %v689_v7  ;;  %v699_v18 = vand.u32 2147483647, %v689_v7  ;;  %vm695_vm14 = vweird.f32 %v689_v7 }
 0x83c   :  { %v702_v25 = vor.u32 1.1754944e-38, %v701_v15  ;;  %vm700_vm4 = vcmp.eq.f32.partialorder %v699_v18, 8.507059e+37 }
 0x840   :  { %v1999_v9 = vpop.eup %1998 }
 0x841   :  { %v691_v6 = vmul.f32 %v1999_v9, %v689_v7  ;;  %vm696_vm13 = vweird.f32 %v1999_v9 }
 0x842   :  { %vm697_vm15 = vmor %vm695_vm14, %vm696_vm13 }
 0x843   :  { %v692_v13 = vsub.f32 1.0, %v691_v6 }
 0x845   :  { %v693_v17 = vmul.f32 %v1999_v9, %v692_v13 }
 0x847   :  { %v694_v23 = vadd.f32 %v1999_v9, %v693_v17 }
 0x849   :  { %v698_v19 = vsel %vm697_vm15, %v1999_v9, %v694_v23  ;;  %v1940_v23 = vld [vmem:[#allocation5 + $0xc8] ss:$0 sm:$0xff] }
 0x84a   :  { %v703_v24 = vsel %vm700_vm4, %v702_v25, %v698_v19  ;;  %v782_v25 = vpop.f32.mrf.mxu1 }
 0x84b   :  { %v706_v26 = vperm.slane %v703_v24, 1  ;;  %v705_v30 = vperm.slane %v703_v24, 0 }
 0x84d   :  { %v712_v27 = vmul.f32 %v1997_v46, %v706_v26  ;;  %v711_v14 = vmul.f32 %v1995_v10, %v706_v26  ;;  %v710_v35 = vmul.f32 %v1993_v45, %v705_v30  ;;  %v709_v37 = vmul.f32 %v1991_v8, %v705_v30 }
 0x84f   :  { %730 = vperm.xlu1 %1931, %v712_v27   ;;  %725 = vperm.xlu0 %1930, %v711_v14  }
 0x857   :  { %720 = vperm.xlu1 %1931, %v710_v35   ;;  %715 = vperm.xlu0 %1930, %v709_v37  }
 0x8c1   :  { %v731_v38 = vpop.permute.xlu1 %730  ;;  %v726_v39 = vpop.permute.xlu0 %725 }
 0x8c2   :  { %v736_v40 = vmul.f32 %v731_v38, %v2360_v31  ;;  %v735_v41 = vmul.f32 %v726_v39, %v2329_v16 }
 0x8c4   :  { %v747_v42 = vsel %vm57_vm0, %v736_v40, 0.0  ;;  %v746_v43 = vsel %vm57_vm0, %v735_v41, 0.0 }
 0x8c5   :  { %v748_v44 = vadd.f32 %v747_v42, %v746_v43 }
 0x8c7   :  { %v749_v46 = vrot.slane %v748_v44, 4 }
 0x8c9   :  { %v750_v10 = vadd.f32 %v749_v46, %v748_v44  ;;  %v721_v11 = vpop.permute.xlu1 %720  ;;  %v716_v47 = vpop.permute.xlu0 %715 }
 0x8ca   :  { %v734_v45 = vmul.f32 %v721_v11, %v2315_v4  ;;  %v733_v8 = vmul.f32 %v716_v47, %v2313_v2 }
 0x8cb   :  { %v751_v48 = vrot.slane %v750_v10, 2 }
 0x8cc   :  { %v738_v53 = vsel %vm57_vm0, %v734_v45, 0.0  ;;  %v737_v54 = vsel %vm57_vm0, %v733_v8, 0.0 }
 0x8cd   :  { %v752_v56 = vadd.f32 %v751_v48, %v750_v10  ;;  %v739_v57 = vadd.f32 %v738_v53, %v737_v54 }
 0x8cf   :  { %v753_v58 = vrot.slane %v752_v56, 1  ;;  %v740_v12 = vrot.slane %v739_v57, 4 }
 0x8d1   :  { %v741_v63 = vadd.f32 %v740_v12, %v739_v57  ;;  %v754_v5 = vadd.f32 %v753_v58, %v752_v56  ;;  %v1941_v58 = vld [vmem:[#allocation5 + $0x110] ss:$0 sm:$0xff]  ;;  %v1942_v12 = vld [vmem:[#allocation5 + $0x158] ss:$0 sm:$0xff] }
 0x8d3   :  { %v742_v28 = vrot.slane %v741_v63, 2  ;;  %v756_v6 = vadd.f32 %v2370_v55, %v754_v5 }
 0x8d5   :  { %v743_v7 = vadd.f32 %v742_v28, %v741_v63  ;;  %v787_v17 = vrot.slane %v756_v6, 7 }
 0x8d7   :  { %v744_v9 = vrot.slane %v743_v7, 1 }
 0x8d9   :  { %v745_v13 = vadd.f32 %v744_v9, %v743_v7 }
 0x8db   :  { %v755_v15 = vadd.f32 %v2370_v55, %v745_v13 }
 0x8dd   :  { %v788_v18 = vsel %vm217_vm2, %v787_v17, %v755_v15  ;;  %v2518_v15 = vld [vmem:[#allocation5 + $0x48] ss:$0 sm:$0xff] }
 0x8de   :  { %1891 = vmatmul.msk.f32.vlgmr.msra.gmra.mxu2 %vm57_vm0, %v788_v18  ;;  %1893 = vmatmul.msk.f32.vlgmr.msra.gmra.mxu3 %vm57_vm0, %v788_v18 }
 0x8e6   :  { %1896 = vmatmul.msk.f32.vlgmr.msrb.gmra.mxu2 %vm57_vm0, %v2412_v34 }
 0x961   :  { %v808_v19 = vpop.f32.mrf.mxu2 }
 0x962   :  { %v809_v24 = vadd.f32 %v808_v19, %v782_v25 }
 0x964   :  { %v813_v26 = vadd.f32 %v1940_v23, %v809_v24 }
 0x966   :  { %2000 = vtanh.f32 %v813_v26  ;;  %v1892_v14 = vmul.f32 -1.442695, %v813_v26 }
 0x968   :  { %2002 = vpow2.f32 %v1892_v14 }
 0x969   :  { %v953_v57 = vpop.f32.mrf.mxu2 }
 0x96c   :  { %v2001_v27 = vpop.eup %2000 }
 0x96d   :  { %836 = vrot.lane.b32.xlu0 %v2001_v27, %s2189_s1 }
 0x96e   :  { %v2003_v30 = vpop.eup %2002 }
 0x96f   :  { %v817_v35 = vadd.f32 1.0, %v2003_v30 }
 0x971   :  { %2004 = vrcp.f32 %v817_v35  ;;  %v829_v34 = vand.u32 2147483648, %v817_v35  ;;  %vm823_vm6 = vweird.f32 %v817_v35  ;;  %v827_v42 = vand.u32 2147483647, %v817_v35 }
 0x973   :  { %v830_v44 = vor.u32 1.1754944e-38, %v829_v34  ;;  %vm828_vm8 = vcmp.eq.f32.partialorder %v827_v42, 8.507059e+37 }
 0x977   :  { %v2005_v37 = vpop.eup %2004 }
 0x978   :  { %v819_v38 = vmul.f32 %v2005_v37, %v817_v35  ;;  %vm824_vm5 = vweird.f32 %v2005_v37 }
 0x979   :  { %vm825_vm7 = vmor %vm823_vm6, %vm824_vm5 }
 0x97a   :  { %v820_v39 = vsub.f32 1.0, %v819_v38 }
 0x97c   :  { %v821_v40 = vmul.f32 %v2005_v37, %v820_v39  ;;  %v2526_v39 = vld [vmem:[#allocation5 + $0x50] ss:$0 sm:$0xff] }
 0x97e   :  { %v822_v41 = vadd.f32 %v2005_v37, %v821_v40 }
 0x980   :  { %v826_v43 = vsel %vm825_vm7, %v2005_v37, %v822_v41 }
 0x981   :  { %v831_v10 = vsel %vm828_vm8, %v830_v44, %v826_v43 }
 0x982   :  { %v834_v47 = vmul.f32 %v831_v10, %v2379_v49  ;;  %v876_v49 = vpop.f32.mrf.mxu3 }
 0x9df   :  { %v837_v46 = vpop.permute.xlu0 %836 }
 0x9e0   :  { %v839_v11 = vmul.f32 %v837_v46, %v831_v10 }
 0x9e2   :  { %841 = vrot.lane.b32.xlu1 %v839_v11, %s2190_s24 }
 0xa54   :  { %v842_v45 = vpop.permute.xlu1 %841 }
 0xa55   :  { %v2503_v8 = vadd.f32 %v842_v45, %v834_v47 }
 0xa57   :  { %2006 = vtanh.f32 %v2503_v8 }
 0xa5d   :  { %v2007_v48 = vpop.eup %2006 }
 0xa5e   :  { %847 = vrot.lane.b32.xlu0 %v2007_v48, %s2189_s1  ;;  %v1943_v48 = vld [vmem:[#allocation5 + $0x170] ss:$0 sm:$0xff] }
 0xad0   :  { %v848_v53 = vpop.permute.xlu0 %847 }
 0xad1   :  { %v850_v54 = vmul.f32 %v848_v53, %v831_v10 }
 0xad3   :  { %880 = vrot.lane.b32.xlu1 %v850_v54, %s2190_s24 }
 0xb45   :  { %v2508_v56 = vpop.permute.xlu1 %880 }
 0xb46   :  { %1894 = vmatmul.msk.f32.vlgmr.msra.gmra.mxu0 %vm57_vm0, %v2508_v56  ;;  %1895 = vmatmul.msk.f32.vlgmr.msra.gmra.mxu1 %vm57_vm0, %v2508_v56 }
 0xb4e   :  { %1898 = vmatmul.msk.f32.vlgmr.msrb.gmra.mxu0 %vm57_vm0, %v2508_v56  ;;  %1899 = vmatmul.msk.f32.vlgmr.msrb.gmra.mxu1 %vm57_vm0, %v2508_v56 }
 0xbc3   :  { %v901_v63 = vpop.f32.mrf.mxu0  ;;  %v933_v5 = vpop.f32.mrf.mxu1 }
 0xbc4   :  { %v902_v28 = vadd.f32 %v901_v63, %v876_v49  ;;  %v954_v7 = vadd.f32 %v953_v57, %v933_v5 }
 0xbc6   :  { %v906_v9 = vadd.f32 %v1941_v58, %v902_v28  ;;  %v958_v6 = vadd.f32 %v1942_v12, %v954_v7 }
 0xbc8   :  { %2008 = vtanh.f32 %v906_v9 }
 0xbc9   :  { %2010 = vtanh.f32 %v958_v6 }
 0xbcb   :  { %v1014_v13 = vpop.f32.mrf.mxu0 }
 0xbcc   :  { %v1015_v17 = vadd.f32 %v2518_v15, %v1014_v13 }
 0xbce   :  { %v2009_v18 = vpop.eup %2008  ;;  %v1018_v23 = vrot.slane %v1015_v17, 1  ;;  %v1019_v25 = vperm.slane %v1015_v17, 0 }
 0xbcf   :  { %v2011_v19 = vpop.eup %2010  ;;  %v988_v24 = vrot.slane %v2009_v18, 1  ;;  %990 = vst [vmem:[#allocation7 + $0x1] sm:$0x1] %v2009_v18 }
 0xbd0   :  { %v1020_v26 = vperm.slane %v1018_v23, 0  ;;  %v1023_v27 = vadd.f32 %v1019_v25, %v2256_v20  ;;  %v1024_v14 = vadd.f32 %v1019_v25, %v2258_v22  ;;  %1897 = vmatmul.msk.f32.vlgmr.msrb.gmra.mxu3 %vm543_vm12, %v2011_v19 }
 0xbd1   :  { %991 = vst [vmem:[#allocation7 + $0x5] sm:$0x1] %v988_v24 }
 0xbd2   :  { %v1025_v30 = vadd.f32 %v1020_v26, %v2264_v29  ;;  %2012 = vtanh.f32 %v1023_v27  ;;  %v1026_v35 = vadd.f32 %v1020_v26, %v2269_v36 }
 0xbd3   :  { %2014 = vtanh.f32 %v1024_v14 }
 0xbd4   :  { %2016 = vtanh.f32 %v1025_v30 }
 0xbd5   :  { %2018 = vtanh.f32 %v1026_v35 }
 0xbd8   :  { %v2013_v37 = vpop.eup %2012 }
 0xbd9   :  { %v2015_v38 = vpop.eup %2014  ;;  %v1031_v40 = vmul.f32 %v2526_v39, %v2013_v37 }
 0xbda   :  { %v2017_v41 = vpop.eup %2016  ;;  %v1032_v34 = vmul.f32 %v2526_v39, %v2015_v38 }
 0xbdb   :  { %v1035_v42 = vsel %vm57_vm0, %v1031_v40, 0.0  ;;  %v1033_v43 = vmul.f32 %v2526_v39, %v2017_v41  ;;  %v2019_v46 = vpop.eup %2018 }
 0xbdc   :  { %v1038_v44 = vsel %vm57_vm0, %v1032_v34, 0.0  ;;  %1036 = vadd.xlane.f32.xlu0 %v1035_v42  ;;  %v1034_v11 = vmul.f32 %v2526_v39, %v2019_v46 }
 0xbdd   :  { %1039 = vadd.xlane.f32.xlu2 %v1038_v44  ;;  %v1041_v10 = vsel %vm57_vm0, %v1033_v43, 0.0 }
 0xbde   :  { %1042 = vadd.xlane.f32.xlu1 %v1041_v10  ;;  %v1044_v47 = vsel %vm57_vm0, %v1034_v11, 0.0 }
 0xbe5   :  { %1045 = vadd.xlane.f32.xlu2 %v1044_v47 }
 0xc4f   :  { %v1037_v53 = vpop.xlane.xlu0 %1036 }
 0xc50   :  { %v1040_v45 = vpop.xlane.xlu2 %1039  ;;  %v1047_v12 = vadd.f32 %v1037_v53, %v2280_v51 }
 0xc51   :  { %v1043_v49 = vpop.xlane.xlu1 %1042  ;;  %v1048_v58 = vadd.f32 %v1040_v45, %v2280_v51 }
 0xc52   :  { %v1049_v5 = vadd.f32 %v1043_v49, %v2280_v51  ;;  %v1055_v9 = vperm.slane %v1047_v12, %v2278_v50 }
 0xc53   :  { %v984_v54 = vpop.f32.mrf.mxu3  ;;  %v1056_v7 = vperm.slane %v1048_v58, %v2283_v52 }
 0xc54   :  { %v985_v57 = vadd.f32 %v1943_v48, %v984_v54  ;;  %v1058_v13 = vperm.slane %v1049_v5, %v2278_v50 }
 0xc55   :  { %v1057_v18 = vsel %vm212_vm1, %v1056_v7, %v1055_v9 }
 0xc56   :  { %v993_v63 = vrot.slane %v985_v57, 1  ;;  %995 = vst [vmem:[#allocation8 + $0x1] sm:$0x1] %v985_v57 }
 0xc58   :  { %996 = vst [vmem:[#allocation8 + $0x5] sm:$0x1] %v993_v63  ;;  %v1046_v28 = vpop.xlane.xlu2 %1045 }
 0xc59   :  { %v1050_v6 = vadd.f32 %v1046_v28, %v2280_v51 }
 0xc5b   :  { %v1059_v17 = vperm.slane %v1050_v6, %v2283_v52 }
 0xc5d   :  { %v1060_v23 = vsel %vm212_vm1, %v1059_v17, %v1058_v13 }
 0xc5e   :  { %v1061_v25 = vsel %vm217_vm2, %v1060_v23, %v1057_v18 }
 0xc5f   :  { %v1063_v19 = vsel %vm220_vm3, %v1061_v25, -inf }
 0xc60   :  { %1064 = vmax.xlane.f32.xlu2 %v1063_v19 }
 0xcd3   :  { %v1065_v24 = vpop.xlane.xlu2 %1064 }
 0xcd4   :  { %v1067_v26 = vperm.slane %v1065_v24, 0  ;;  %v1068_v27 = vperm.slane %v1065_v24, 1 }
 0xcd6   :  { %v1071_v14 = vsub.f32 %v1047_v12, %v1067_v26  ;;  %v1072_v30 = vsub.f32 %v1048_v58, %v1067_v26  ;;  %v1073_v35 = vsub.f32 %v1049_v5, %v1068_v27  ;;  %v1074_v41 = vsub.f32 %v1050_v6, %v1068_v27 }
 0xcd8   :  { %v1075_v37 = vmul.f32 1.442695, %v1071_v14  ;;  %v1077_v38 = vmul.f32 1.442695, %v1072_v30  ;;  %v1079_v40 = vmul.f32 1.442695, %v1073_v35 }
 0xcd9   :  { %v1081_v34 = vmul.f32 1.442695, %v1074_v41  ;;  %v1179_v41 = vld [vmem:[#allocation5 + $0x98] sm:$0xff] }
 0xcda   :  { %2020 = vpow2.f32 %v1075_v37  ;;  %v1180_v37 = vld [vmem:[#allocation5 + $0xa0] sm:$0xff] }
 0xcdb   :  { %2022 = vpow2.f32 %v1077_v38  ;;  %v1278_v38 = vld [vmem:[#allocation5 + $0x108] sm:$0xff]  ;;  %1223 = vmatpush.msra.mxu2 %v1180_v37 }
 0xcdc   :  { %2024 = vpow2.f32 %v1079_v40  ;;  %1291 = vmatpush.msra.mxu3 %v1278_v38 }
 0xcdd   :  { %2026 = vpow2.f32 %v1081_v34  ;;  %v1277_v34 = vld [vmem:[#allocation5 + $0x100] sm:$0xff]  ;;  %1224 = vmatpush.msra.mxu2 %v1179_v41 }
 0xcde   :  { %1292 = vmatpush.msra.mxu3 %v1277_v34 }
 0xce0   :  { %v2021_v42 = vpop.eup %2020 }
 0xce1   :  { %v2023_v43 = vpop.eup %2022  ;;  %1088 = vperm.xlu2 %1929, %v2021_v42  }
 0xce2   :  { %v2025_v44 = vpop.eup %2024  ;;  %1091 = vperm.xlu0 %1930, %v2023_v43  }
 0xce3   :  { %1094 = vperm.xlu1 %1931, %v2025_v44   ;;  %v2027_v46 = vpop.eup %2026 }
 0xce9   :  { %1097 = vperm.xlu2 %1929, %v2027_v46  }
 0xd3b   :  { %v1089_v10 = vpop.permute.xlu2 %1088 }
 0xd3c   :  { %v1099_v45 = vperm.slane %v1089_v10, %v2278_v50  ;;  %v1178_v10 = vld [vmem:[#allocation5 + $0x90] sm:$0xff] }
 0xd3d   :  { %1225 = vmatpush.msra.mxu2 %v1178_v10 }
 0xd43   :  { %v1098_v11 = vpop.permute.xlu2 %1097 }
 0xd44   :  { %v1103_v54 = vperm.slane %v1098_v11, %v2283_v52  ;;  %v1276_v11 = vld [vmem:[#allocation5 + $0xf8] sm:$0xff] }
 0xd45   :  { %1293 = vmatpush.msra.mxu3 %v1276_v11 }
 0xd54   :  { %v1092_v47 = vpop.permute.xlu0 %1091 }
 0xd55   :  { %v1095_v48 = vpop.permute.xlu1 %1094  ;;  %v1100_v53 = vperm.slane %v1092_v47, %v2283_v52  ;;  %v1177_v47 = vld [vmem:[#allocation5 + $0x88] sm:$0xff] }
 0xd56   :  { %v1102_v49 = vperm.slane %v1095_v48, %v2278_v50  ;;  %1226 = vmatpush.msra.mxu2 %v1177_v47 }
 0xd57   :  { %v1101_v57 = vsel %vm212_vm1, %v1100_v53, %v1099_v45 }
 0xd58   :  { %v1104_v58 = vsel %vm212_vm1, %v1103_v54, %v1102_v49  ;;  %1368 = vmatpush.msrb.mxu2 %v2400_v0 }
 0xd59   :  { %v1105_v12 = vsel %vm217_vm2, %v1104_v58, %v1101_v57 }
 0xd5a   :  { %v1107_v63 = vsel %vm220_vm3, %v1105_v12, 0.0  ;;  %1369 = vmatpush.msrb.mxu2 %v2402_v21 }
 0xd5b   :  { %1108 = vadd.xlane.f32.xlu2 %v1107_v63 }
 0xd5c   :  { %1370 = vmatpush.msrb.mxu2 %v2405_v32 }
 0xd5e   :  { %1371 = vmatpush.msrb.mxu2 %v2408_v33 }
 0xdce   :  { %v1109_v5 = vpop.xlane.xlu2 %1108 }
 0xdcf   :  { %2028 = vrcp.f32 %v1109_v5  ;;  %v1121_v6 = vand.u32 2147483648, %v1109_v5  ;;  %v1119_v17 = vand.u32 2147483647, %v1109_v5  ;;  %vm1115_vm10 = vweird.f32 %v1109_v5 }
 0xdd1   :  { %v1122_v23 = vor.u32 1.1754944e-38, %v1121_v6  ;;  %vm1120_vm13 = vcmp.eq.f32.partialorder %v1119_v17, 8.507059e+37 }
 0xdd5   :  { %v2029_v28 = vpop.eup %2028 }
 0xdd6   :  { %v1111_v7 = vmul.f32 %v2029_v28, %v1109_v5  ;;  %vm1116_vm9 = vweird.f32 %v2029_v28 }
 0xdd7   :  { %vm1117_vm11 = vmor %vm1115_vm10, %vm1116_vm9 }
 0xdd8   :  { %v1112_v9 = vsub.f32 1.0, %v1111_v7 }
 0xdda   :  { %v1113_v13 = vmul.f32 %v2029_v28, %v1112_v9 }
 0xddc   :  { %v1114_v18 = vadd.f32 %v2029_v28, %v1113_v13 }
 0xdde   :  { %v1118_v25 = vsel %vm1117_vm11, %v2029_v28, %v1114_v18 }
 0xddf   :  { %v1123_v19 = vsel %vm1120_vm13, %v1122_v23, %v1118_v25 }
 0xde0   :  { %v1126_v24 = vperm.slane %v1123_v19, 1  ;;  %v1125_v26 = vperm.slane %v1123_v19, 0 }
 0xde2   :  { %v1131_v27 = vmul.f32 %v2025_v44, %v1126_v24  ;;  %v1129_v14 = vmul.f32 %v2021_v42, %v1125_v26  ;;  %v1132_v30 = vmul.f32 %v2027_v46, %v1126_v24  ;;  %v1130_v35 = vmul.f32 %v2023_v43, %v1125_v26  ;;  %v1275_v44 = vld [vmem:[#allocation5 + $0xf0] sm:$0xff]  ;;  %v1944_v24 = vld [vmem:[#allocation5 + $0xc8] ss:$0 sm:$0xff] }
 0xde3   :  { %1294 = vmatpush.msra.mxu3 %v1275_v44 }
 0xde4   :  { %1145 = vperm.xlu0 %1930, %v1131_v27   ;;  %1135 = vperm.xlu1 %1931, %v1129_v14  }
 0xde5   :  { %1401 = vmatpush.msrb.mxu3 %v2439_v1 }
 0xde7   :  { %1402 = vmatpush.msrb.mxu3 %v2441_v3 }
 0xdec   :  { %1150 = vperm.xlu0 %1930, %v1132_v30  }
 0xdf4   :  { %1140 = vperm.xlu0 %1930, %v1130_v35  }
 0xe56   :  { %v1146_v40 = vpop.permute.xlu0 %1145  ;;  %v1136_v53 = vpop.permute.xlu1 %1135 }
 0xe57   :  { %v1155_v42 = vmul.f32 %v1146_v40, %v2329_v16  ;;  %v1153_v1 = vmul.f32 %v1136_v53, %v2313_v2 }
 0xe59   :  { %v1166_v45 = vsel %vm57_vm0, %v1155_v42, 0.0  ;;  %v1157_v58 = vsel %vm57_vm0, %v1153_v1, 0.0  ;;  %v1274_v1 = vld [vmem:[#allocation5 + $0xe8] sm:$0xff] }
 0xe5a   :  { %1316 = vmatpush.msra.mxu0 %v1274_v1 }
 0xe5e   :  { %v1151_v43 = vpop.permute.xlu0 %1150 }
 0xe5f   :  { %v1156_v46 = vmul.f32 %v1151_v43, %v2360_v31 }
 0xe61   :  { %v1167_v48 = vsel %vm57_vm0, %v1156_v46, 0.0 }
 0xe62   :  { %v1168_v54 = vadd.f32 %v1167_v48, %v1166_v45 }
 0xe64   :  { %v1169_v0 = vrot.slane %v1168_v54, 4 }
 0xe66   :  { %v1170_v49 = vadd.f32 %v1169_v0, %v1168_v54  ;;  %v1141_v57 = vpop.permute.xlu0 %1140 }
 0xe67   :  { %v1154_v21 = vmul.f32 %v1141_v57, %v2315_v4  ;;  %v1273_v57 = vld [vmem:[#allocation5 + $0xe0] sm:$0xff] }
 0xe68   :  { %v1171_v3 = vrot.slane %v1170_v49, 2  ;;  %1317 = vmatpush.msra.mxu0 %v1273_v57 }
 0xe69   :  { %v1158_v32 = vsel %vm57_vm0, %v1154_v21, 0.0  ;;  %v1334_v21 = vld [vmem:[#allocation5 + $0x148] sm:$0xff] }
 0xe6a   :  { %v1172_v12 = vadd.f32 %v1171_v3, %v1170_v49  ;;  %v1159_v63 = vadd.f32 %v1158_v32, %v1157_v58  ;;  %v1335_v49 = vld [vmem:[#allocation5 + $0x150] sm:$0xff]  ;;  %1318 = vmatpush.msra.mxu0 %v2383_v59  ;;  %v2075_v3 = vld [vmem:[#allocation5 + $0x38] sm:$0xff]  ;;  %v2077_v32 = vld [vmem:[#allocation5 + $0x28] sm:$0xff] }
 0xe6b   :  { %1348 = vmatpush.msra.mxu1 %v1335_v49  ;;  %v2076_v58 = vld [vmem:[#allocation5 + $0x30] sm:$0xff]  ;;  %v1603_v59 = vld [vmem:[#allocation5 + $0xb8] sm:$0xff] }
 0xe6c   :  { %v1173_v5 = vrot.slane %v1172_v12, 1  ;;  %v1160_v28 = vrot.slane %v1159_v63, 4  ;;  %1319 = vmatpush.msra.mxu0 %v2387_v61  ;;  %v1601_v61 = vld [vmem:[#allocation5 + $0xa8] sm:$0xff] }
 0xe6d   :  { %1349 = vmatpush.msra.mxu1 %v1334_v21 }
 0xe6e   :  { %v1161_v7 = vadd.f32 %v1160_v28, %v1159_v63  ;;  %v1174_v9 = vadd.f32 %v1173_v5, %v1172_v12  ;;  %v1604_v5 = vld [vmem:[#allocation5 + $0xc0] sm:$0xff] }
 0xe6f   :  { %1350 = vmatpush.msra.mxu1 %v2385_v60  ;;  %v1602_v60 = vld [vmem:[#allocation5 + $0xb0] sm:$0xff] }
 0xe70   :  { %v1162_v6 = vrot.slane %v1161_v7, 2  ;;  %v1176_v17 = vadd.f32 %v2370_v55, %v1174_v9  ;;  %v1945_v9 = vld [vmem:[#allocation5 + $0x110] ss:$0 sm:$0xff] }
 0xe71   :  { %1351 = vmatpush.msra.mxu1 %v2389_v62 }
 0xe72   :  { %v1163_v33 = vadd.f32 %v1162_v6, %v1161_v7  ;;  %v1207_v25 = vrot.slane %v1176_v17, 7  ;;  %v1946_v6 = vld [vmem:[#allocation5 + $0x158] ss:$0 sm:$0xff] }
 0xe73   :  { %1617 = vmatpush.msrb.mxu1 %v1604_v5 }
 0xe74   :  { %v1164_v13 = vrot.slane %v1163_v33, 1 }
 0xe75   :  { %1618 = vmatpush.msrb.mxu1 %v1603_v59 }
 0xe76   :  { %v1165_v18 = vadd.f32 %v1164_v13, %v1163_v33 }
 0xe77   :  { %1619 = vmatpush.msrb.mxu1 %v1602_v60 }
 0xe78   :  { %v1175_v23 = vadd.f32 %v2370_v55, %v1165_v18  ;;  %v1202_v55 = vpop.f32.mrf.mxu1 }
 0xe79   :  { %1620 = vmatpush.msrb.mxu1 %v1601_v61 }
 0xe7a   :  { %v1208_v19 = vsel %vm217_vm2, %v1207_v25, %v1175_v23 }
 0xe7b   :  { %1900 = vmatmul.msk.f32.vlgmr.msra.gmra.mxu2 %vm57_vm0, %v1208_v19  ;;  %1902 = vmatmul.msk.f32.vlgmr.msra.gmra.mxu3 %vm57_vm0, %v1208_v19 }
 0xe7c   :  { %1643 = vmatpush.msra.mxu2 %v1180_v37  ;;  %1711 = vmatpush.msra.mxu3 %v1278_v38 }
 0xe7e   :  { %1644 = vmatpush.msra.mxu2 %v1179_v41  ;;  %1712 = vmatpush.msra.mxu3 %v1277_v34 }
 0xe80   :  { %1645 = vmatpush.msra.mxu2 %v1178_v10  ;;  %1713 = vmatpush.msra.mxu3 %v1276_v11 }
 0xe82   :  { %1646 = vmatpush.msra.mxu2 %v1177_v47  ;;  %1714 = vmatpush.msra.mxu3 %v1275_v44 }
 0xe83   :  { %1905 = vmatmul.msk.f32.vlgmr.msrb.gmra.mxu2 %vm57_vm0, %v2508_v56 }
 0xefe   :  { %v1228_v26 = vpop.f32.mrf.mxu2  ;;  %v1296_v28 = vpop.f32.mrf.mxu3 }
 0xeff   :  { %v1229_v27 = vadd.f32 %v1228_v26, %v1202_v55 }
 0xf01   :  { %v1233_v14 = vadd.f32 %v1944_v24, %v1229_v27 }
 0xf03   :  { %2030 = vtanh.f32 %v1233_v14  ;;  %v1901_v35 = vmul.f32 -1.442695, %v1233_v14 }
 0xf05   :  { %2032 = vpow2.f32 %v1901_v35 }
 0xf06   :  { %v1373_v7 = vpop.f32.mrf.mxu2 }
 0xf09   :  { %v2031_v30 = vpop.eup %2030 }
 0xf0a   :  { %1256 = vrot.lane.b32.xlu1 %v2031_v30, %s2189_s1 }
 0xf0b   :  { %v2033_v37 = vpop.eup %2032 }
 0xf0c   :  { %v1237_v38 = vadd.f32 1.0, %v2033_v37 }
 0xf0e   :  { %2034 = vrcp.f32 %v1237_v38  ;;  %v1249_v56 = vand.u32 2147483648, %v1237_v38  ;;  %vm1243_vm15 = vweird.f32 %v1237_v38  ;;  %v1247_v47 = vand.u32 2147483647, %v1237_v38 }
 0xf10   :  { %v1250_v42 = vor.u32 1.1754944e-38, %v1249_v56  ;;  %vm1248_vm5 = vcmp.eq.f32.partialorder %v1247_v47, 8.507059e+37 }
 0xf14   :  { %v2035_v40 = vpop.eup %2034 }
 0xf15   :  { %v1239_v41 = vmul.f32 %v2035_v40, %v1237_v38  ;;  %vm1244_vm14 = vweird.f32 %v2035_v40 }
 0xf16   :  { %vm1245_vm4 = vmor %vm1243_vm15, %vm1244_vm14 }
 0xf17   :  { %v1240_v34 = vsub.f32 1.0, %v1239_v41 }
 0xf19   :  { %v1241_v10 = vmul.f32 %v2035_v40, %v1240_v34 }
 0xf1b   :  { %v1242_v11 = vadd.f32 %v2035_v40, %v1241_v10 }
 0xf1d   :  { %v1246_v44 = vsel %vm1245_vm4, %v2035_v40, %v1242_v11 }
 0xf1e   :  { %v1251_v46 = vsel %vm1248_vm5, %v1250_v42, %v1246_v44 }
 0xf1f   :  { %v1254_v48 = vmul.f32 %v1251_v46, %v2503_v8  ;;  %v2074_v8 = vld [vmem:[#allocation5 + $0x40] sm:$0xff] }
 0xf20   :  { %1429 = vmatpush.msrb.mxu0 %v2074_v8 }
 0xf22   :  { %1430 = vmatpush.msrb.mxu0 %v2075_v3 }
 0xf24   :  { %1431 = vmatpush.msrb.mxu0 %v2076_v58 }
 0xf26   :  { %1432 = vmatpush.msrb.mxu0 %v2077_v32 }
 0xf7c   :  { %v1257_v43 = vpop.permute.xlu1 %1256 }
 0xf7d   :  { %v1259_v45 = vmul.f32 %v1257_v43, %v1251_v46 }
 0xf7f   :  { %1261 = vrot.lane.b32.xlu0 %v1259_v45, %s2190_s24 }
 0xff1   :  { %v1262_v53 = vpop.permute.xlu0 %1261 }
 0xff2   :  { %v2580_v54 = vadd.f32 %v1262_v53, %v1254_v48 }
 0xff4   :  { %2036 = vtanh.f32 %v2580_v54 }
 0xffa   :  { %v2037_v0 = vpop.eup %2036 }
 0xffb   :  { %1267 = vrot.lane.b32.xlu1 %v2037_v0, %s2189_s1 }
0x106d   :  { %v1268_v12 = vpop.permute.xlu1 %1267 }
0x106e   :  { %v1270_v63 = vmul.f32 %v1268_v12, %v1251_v46  ;;  %v1947_v46 = vld [vmem:[#allocation5 + $0x170] ss:$0 sm:$0xff] }
0x1070   :  { %1300 = vrot.lane.b32.xlu0 %v1270_v63, %s2190_s24 }
0x10e2   :  { %v2589_v62 = vpop.permute.xlu0 %1300 }
0x10e3   :  { %1903 = vmatmul.msk.f32.vlgmr.msra.gmra.mxu0 %vm57_vm0, %v2589_v62  ;;  %1904 = vmatmul.msk.f32.vlgmr.msra.gmra.mxu1 %vm57_vm0, %v2589_v62 }
0x10e4   :  { %1768 = vmatpush.msra.mxu1 %v1335_v49  ;;  %1736 = vmatpush.msra.mxu0 %v1274_v1 }
0x10e6   :  { %1769 = vmatpush.msra.mxu1 %v1334_v21  ;;  %1737 = vmatpush.msra.mxu0 %v1273_v57 }
0x10eb   :  { %1907 = vmatmul.msk.f32.vlgmr.msrb.gmra.mxu0 %vm57_vm0, %v2589_v62  ;;  %1908 = vmatmul.msk.f32.vlgmr.msrb.gmra.mxu1 %vm57_vm0, %v2589_v62 }
0x1160   :  { %v1321_v33 = vpop.f32.mrf.mxu0  ;;  %v1353_v13 = vpop.f32.mrf.mxu1 }
0x1161   :  { %v1322_v17 = vadd.f32 %v1321_v33, %v1296_v28  ;;  %v1374_v18 = vadd.f32 %v1373_v7, %v1353_v13 }
0x1163   :  { %v1326_v23 = vadd.f32 %v1945_v9, %v1322_v17  ;;  %v1378_v25 = vadd.f32 %v1946_v6, %v1374_v18 }
0x1165   :  { %2038 = vtanh.f32 %v1326_v23 }
0x1166   :  { %2040 = vtanh.f32 %v1378_v25 }
0x1168   :  { %v1434_v19 = vpop.f32.mrf.mxu0 }
0x1169   :  { %v1435_v24 = vadd.f32 %v2518_v15, %v1434_v19 }
0x116b   :  { %v2039_v55 = vpop.eup %2038  ;;  %v1438_v26 = vrot.slane %v1435_v24, 1  ;;  %v1439_v27 = vperm.slane %v1435_v24, 0 }
0x116c   :  { %v2041_v14 = vpop.eup %2040  ;;  %v1408_v30 = vrot.slane %v2039_v55, 1  ;;  %1410 = vst [vmem:[#allocation7 + $0x2] sm:$0x1] %v2039_v55 }
0x116d   :  { %v1440_v35 = vperm.slane %v1438_v26, 0  ;;  %v1443_v37 = vadd.f32 %v1439_v27, %v2256_v20  ;;  %v1444_v38 = vadd.f32 %v1439_v27, %v2258_v22  ;;  %1906 = vmatmul.msk.f32.vlgmr.msrb.gmra.mxu3 %vm543_vm12, %v2041_v14 }
0x116e   :  { %1411 = vst [vmem:[#allocation7 + $0x6] sm:$0x1] %v1408_v30 }
0x116f   :  { %v1445_v40 = vadd.f32 %v1440_v35, %v2264_v29  ;;  %2042 = vtanh.f32 %v1443_v37  ;;  %v1446_v41 = vadd.f32 %v1440_v35, %v2269_v36 }
0x1170   :  { %2044 = vtanh.f32 %v1444_v38 }
0x1171   :  { %2046 = vtanh.f32 %v1445_v40 }
0x1172   :  { %2048 = vtanh.f32 %v1446_v41 }
0x1175   :  { %v2043_v15 = vpop.eup %2042 }
0x1176   :  { %v2045_v34 = vpop.eup %2044  ;;  %v1451_v10 = vmul.f32 %v2526_v39, %v2043_v15 }
0x1177   :  { %v2047_v11 = vpop.eup %2046  ;;  %v1452_v20 = vmul.f32 %v2526_v39, %v2045_v34 }
0x1178   :  { %v1455_v22 = vsel %vm57_vm0, %v1451_v10, 0.0  ;;  %v1453_v56 = vmul.f32 %v2526_v39, %v2047_v11  ;;  %v2049_v29 = vpop.eup %2048 }
0x1179   :  { %v1458_v47 = vsel %vm57_vm0, %v1452_v20, 0.0  ;;  %1456 = vadd.xlane.f32.xlu1 %v1455_v22  ;;  %v1454_v44 = vmul.f32 %v2526_v39, %v2049_v29 }
0x117a   :  { %1459 = vadd.xlane.f32.xlu2 %v1458_v47  ;;  %v1461_v36 = vsel %vm57_vm0, %v1453_v56, 0.0 }
0x117b   :  { %1462 = vadd.xlane.f32.xlu0 %v1461_v36  ;;  %v1464_v42 = vsel %vm57_vm0, %v1454_v44, 0.0 }
0x1182   :  { %1465 = vadd.xlane.f32.xlu2 %v1464_v42 }
0x11ec   :  { %v1457_v45 = vpop.xlane.xlu1 %1456 }
0x11ed   :  { %v1460_v43 = vpop.xlane.xlu2 %1459  ;;  %v1467_v49 = vadd.f32 %v1457_v45, %v2280_v51 }
0x11ee   :  { %v1463_v53 = vpop.xlane.xlu0 %1462  ;;  %v1468_v1 = vadd.f32 %v1460_v43, %v2280_v51 }
0x11ef   :  { %v1469_v21 = vadd.f32 %v1463_v53, %v2280_v51  ;;  %v1475_v3 = vperm.slane %v1467_v49, %v2278_v50 }
0x11f0   :  { %v1404_v48 = vpop.f32.mrf.mxu3  ;;  %v1476_v39 = vperm.slane %v1468_v1, %v2283_v52 }
0x11f1   :  { %v1405_v0 = vadd.f32 %v1947_v46, %v1404_v48  ;;  %v1478_v32 = vperm.slane %v1469_v21, %v2278_v50 }
0x11f2   :  { %v1477_v63 = vsel %vm212_vm1, %v1476_v39, %v1475_v3 }
0x11f3   :  { %v1413_v57 = vrot.slane %v1405_v0, 1  ;;  %1415 = vst [vmem:[#allocation8 + $0x2] sm:$0x1] %v1405_v0 }
0x11f5   :  { %1416 = vst [vmem:[#allocation8 + $0x6] sm:$0x1] %v1413_v57  ;;  %v1466_v8 = vpop.xlane.xlu2 %1465  ;;  %v1749_v57 = vld [vmem:[#allocation5 + $0x120] sm:$0xff] }
0x11f6   :  { %v1470_v58 = vadd.f32 %v1466_v8, %v2280_v51 }
0x11f8   :  { %v1479_v12 = vperm.slane %v1470_v58, %v2283_v52 }
0x11fa   :  { %v1480_v5 = vsel %vm212_vm1, %v1479_v12, %v1478_v32 }
0x11fb   :  { %v1481_v59 = vsel %vm217_vm2, %v1480_v5, %v1477_v63 }
0x11fc   :  { %v1483_v60 = vsel %vm220_vm3, %v1481_v59, -inf }
0x11fd   :  { %1484 = vmax.xlane.f32.xlu2 %v1483_v60 }
0x1270   :  { %v1485_v61 = vpop.xlane.xlu2 %1484 }
0x1271   :  { %v1487_v28 = vperm.slane %v1485_v61, 0  ;;  %v1488_v7 = vperm.slane %v1485_v61, 1 }
0x1273   :  { %v1491_v9 = vsub.f32 %v1467_v49, %v1487_v28  ;;  %v1492_v6 = vsub.f32 %v1468_v1, %v1487_v28  ;;  %v1493_v33 = vsub.f32 %v1469_v21, %v1488_v7  ;;  %v1494_v18 = vsub.f32 %v1470_v58, %v1488_v7  ;;  %v1751_v1 = vld [vmem:[#allocation5 + $0x130] sm:$0xff]  ;;  %v1750_v49 = vld [vmem:[#allocation5 + $0x128] sm:$0xff]  ;;  %v1748_v58 = vld [vmem:[#allocation5 + $0x118] sm:$0xff] }
0x1274   :  { %1788 = vmatpush.msrb.mxu2 %v1751_v1  ;;  %v1691_v1 = vld [vmem:[#allocation5 + $0xd0] sm:$0xff] }
0x1275   :  { %v1495_v51 = vmul.f32 1.442695, %v1491_v9  ;;  %v1497_v13 = vmul.f32 1.442695, %v1492_v6  ;;  %v1499_v17 = vmul.f32 1.442695, %v1493_v33 }
0x1276   :  { %v1501_v23 = vmul.f32 1.442695, %v1494_v18  ;;  %1789 = vmatpush.msrb.mxu2 %v1750_v49 }
0x1277   :  { %2050 = vpow2.f32 %v1495_v51 }
0x1278   :  { %2052 = vpow2.f32 %v1497_v13  ;;  %1790 = vmatpush.msrb.mxu2 %v1749_v57 }
0x1279   :  { %2054 = vpow2.f32 %v1499_v17 }
0x127a   :  { %2056 = vpow2.f32 %v1501_v23  ;;  %1791 = vmatpush.msrb.mxu2 %v1748_v58  ;;  %v1949_v58 = vld [vmem:[#allocation5 + $0x110] ss:$0 sm:$0xff] }
0x127d   :  { %v2051_v25 = vpop.eup %2050 }
0x127e   :  { %v2053_v19 = vpop.eup %2052  ;;  %1508 = vperm.xlu2 %1929, %v2051_v25  }
0x127f   :  { %v2055_v24 = vpop.eup %2054  ;;  %1511 = vperm.xlu1 %1931, %v2053_v19  }
0x1280   :  { %1514 = vperm.xlu0 %1930, %v2055_v24   ;;  %v2057_v55 = vpop.eup %2056 }
0x1286   :  { %1517 = vperm.xlu2 %1929, %v2057_v55  }
0x12d8   :  { %v1509_v26 = vpop.permute.xlu2 %1508 }
0x12d9   :  { %v1519_v30 = vperm.slane %v1509_v26, %v2278_v50 }
0x12e0   :  { %v1518_v27 = vpop.permute.xlu2 %1517 }
0x12e1   :  { %v1523_v38 = vperm.slane %v1518_v27, %v2283_v52 }
0x12f1   :  { %v1512_v14 = vpop.permute.xlu1 %1511 }
0x12f2   :  { %v1515_v35 = vpop.permute.xlu0 %1514  ;;  %v1520_v37 = vperm.slane %v1512_v14, %v2283_v52  ;;  %v1948_v14 = vld [vmem:[#allocation5 + $0xc8] ss:$0 sm:$0xff] }
0x12f3   :  { %v1522_v40 = vperm.slane %v1515_v35, %v2278_v50 }
0x12f4   :  { %v1521_v41 = vsel %vm212_vm1, %v1520_v37, %v1519_v30  ;;  %v1622_v30 = vpop.f32.mrf.mxu1 }
0x12f5   :  { %v1524_v15 = vsel %vm212_vm1, %v1523_v38, %v1522_v40 }
0x12f6   :  { %v1525_v34 = vsel %vm217_vm2, %v1524_v15, %v1521_v41 }
0x12f7   :  { %v1527_v10 = vsel %vm220_vm3, %v1525_v34, 0.0 }
0x12f8   :  { %1528 = vadd.xlane.f32.xlu2 %v1527_v10 }
0x136b   :  { %v1529_v11 = vpop.xlane.xlu2 %1528 }
0x136c   :  { %2058 = vrcp.f32 %v1529_v11  ;;  %v1541_v47 = vand.u32 2147483648, %v1529_v11  ;;  %v1539_v52 = vand.u32 2147483647, %v1529_v11  ;;  %vm1535_vm7 = vweird.f32 %v1529_v11 }
0x136e   :  { %v1542_v50 = vor.u32 1.1754944e-38, %v1541_v47  ;;  %vm1540_vm1 = vcmp.eq.f32.partialorder %v1539_v52, 8.507059e+37 }
0x1372   :  { %v2059_v20 = vpop.eup %2058 }
0x1373   :  { %v1531_v22 = vmul.f32 %v2059_v20, %v1529_v11  ;;  %vm1536_vm6 = vweird.f32 %v2059_v20 }
0x1374   :  { %vm1537_vm8 = vmor %vm1535_vm7, %vm1536_vm6 }
0x1375   :  { %v1532_v56 = vsub.f32 1.0, %v1531_v22 }
0x1377   :  { %v1533_v29 = vmul.f32 %v2059_v20, %v1532_v56 }
0x1379   :  { %v1534_v36 = vadd.f32 %v2059_v20, %v1533_v29 }
0x137b   :  { %v1538_v44 = vsel %vm1537_vm8, %v2059_v20, %v1534_v36 }
0x137c   :  { %v1543_v42 = vsel %vm1540_vm1, %v1542_v50, %v1538_v44 }
0x137d   :  { %v1546_v43 = vperm.slane %v1543_v42, 1  ;;  %v1545_v48 = vperm.slane %v1543_v42, 0 }
0x137f   :  { %v1552_v46 = vmul.f32 %v2057_v55, %v1546_v43  ;;  %v1551_v45 = vmul.f32 %v2055_v24, %v1546_v43  ;;  %v1550_v53 = vmul.f32 %v2053_v19, %v1545_v48  ;;  %v1549_v0 = vmul.f32 %v2051_v25, %v1545_v48  ;;  %v2078_v24 = vld [vmem:[#allocation5 + $0x80] ss:$0 sm:$0xff] }
0x1380   :  { %v1753_v48 = vld [vmem:[#allocation5 + $0x140] sm:$0xff] }
0x1381   :  { %1570 = vperm.xlu1 %1931, %v1552_v46   ;;  %1565 = vperm.xlu0 %1930, %v1551_v45  }
0x1382   :  { %1770 = vmatpush.msra.mxu1 %v1753_v48 }
0x1389   :  { %1560 = vperm.xlu1 %1931, %v1550_v53   ;;  %1555 = vperm.xlu0 %1930, %v1549_v0   ;;  %v1692_v53 = vld [vmem:[#allocation5 + $0xd8] sm:$0xff] }
0x138a   :  { %v1752_v0 = vld [vmem:[#allocation5 + $0x138] sm:$0xff]  ;;  %1738 = vmatpush.msra.mxu0 %v1692_v53 }
0x138b   :  { %1771 = vmatpush.msra.mxu1 %v1752_v0 }
0x138c   :  { %1739 = vmatpush.msra.mxu0 %v1691_v1 }
0x13f3   :  { %v1571_v21 = vpop.permute.xlu1 %1570  ;;  %v1566_v8 = vpop.permute.xlu0 %1565 }
0x13f4   :  { %v1576_v39 = vmul.f32 %v1571_v21, %v2360_v31  ;;  %v1575_v3 = vmul.f32 %v1566_v8, %v2329_v16  ;;  %v1800_v8 = vld [vmem:[#allocation5 + $0x160] sm:$0xff] }
0x13f6   :  { %v1587_v32 = vsel %vm57_vm0, %v1576_v39, 0.0  ;;  %v1586_v12 = vsel %vm57_vm0, %v1575_v3, 0.0 }
0x13f7   :  { %v1588_v63 = vadd.f32 %v1587_v32, %v1586_v12  ;;  %v1950_v32 = vld [vmem:[#allocation5 + $0x158] ss:$0 sm:$0xff] }
0x13f9   :  { %v1589_v5 = vrot.slane %v1588_v63, 4 }
0x13fb   :  { %v1590_v59 = vadd.f32 %v1589_v5, %v1588_v63  ;;  %v1561_v60 = vpop.permute.xlu1 %1560  ;;  %v1556_v61 = vpop.permute.xlu0 %1555 }
0x13fc   :  { %v1574_v28 = vmul.f32 %v1561_v60, %v2315_v4  ;;  %v1573_v7 = vmul.f32 %v1556_v61, %v2313_v2 }
0x13fd   :  { %v1591_v9 = vrot.slane %v1590_v59, 2 }
0x13fe   :  { %v1578_v31 = vsel %vm57_vm0, %v1574_v28, 0.0  ;;  %v1577_v16 = vsel %vm57_vm0, %v1573_v7, 0.0 }
0x13ff   :  { %v1592_v6 = vadd.f32 %v1591_v9, %v1590_v59  ;;  %v1579_v33 = vadd.f32 %v1578_v31, %v1577_v16  ;;  %v1951_v31 = vld [vmem:[#allocation5 + $0x170] ss:$0 sm:$0xff] }
0x1401   :  { %v1593_v51 = vrot.slane %v1592_v6, 1  ;;  %v1580_v13 = vrot.slane %v1579_v33, 4 }
0x1403   :  { %v1581_v17 = vadd.f32 %v1580_v13, %v1579_v33  ;;  %v1594_v18 = vadd.f32 %v1593_v51, %v1592_v6 }
0x1405   :  { %v1582_v23 = vrot.slane %v1581_v17, 2  ;;  %v1596_v55 = vadd.f32 %v2078_v24, %v1594_v18 }
0x1407   :  { %v1583_v25 = vadd.f32 %v1582_v23, %v1581_v17  ;;  %v1627_v27 = vrot.slane %v1596_v55, 7 }
0x1409   :  { %v1584_v19 = vrot.slane %v1583_v25, 1 }
0x140b   :  { %v1585_v26 = vadd.f32 %v1584_v19, %v1583_v25 }
0x140d   :  { %v1595_v4 = vadd.f32 %v2078_v24, %v1585_v26 }
0x140f   :  { %v1628_v2 = vsel %vm217_vm2, %v1627_v27, %v1595_v4 }
0x1410   :  { %1909 = vmatmul.msk.f32.vlgmr.msra.gmra.mxu2 %vm57_vm0, %v1628_v2  ;;  %1911 = vmatmul.msk.f32.vlgmr.msra.gmra.mxu3 %vm57_vm0, %v1628_v2 }
0x1418   :  { %1914 = vmatmul.msk.f32.vlgmr.msrb.gmra.mxu2 %vm57_vm0, %v2589_v62 }
0x1493   :  { %v1648_v35 = vpop.f32.mrf.mxu2  ;;  %v1716_v39 = vpop.f32.mrf.mxu3 }
0x1494   :  { %v1649_v37 = vadd.f32 %v1648_v35, %v1622_v30 }
0x1496   :  { %v1653_v38 = vadd.f32 %v1948_v14, %v1649_v37 }
0x1498   :  { %2060 = vtanh.f32 %v1653_v38  ;;  %v1910_v41 = vmul.f32 -1.442695, %v1653_v38 }
0x149a   :  { %2062 = vpow2.f32 %v1910_v41 }
0x149b   :  { %v1793_v3 = vpop.f32.mrf.mxu2 }
0x149e   :  { %v2061_v40 = vpop.eup %2060 }
0x149f   :  { %1676 = vrot.lane.b32.xlu0 %v2061_v40, %s2189_s1 }
0x14a0   :  { %v2063_v15 = vpop.eup %2062 }
0x14a1   :  { %v1657_v34 = vadd.f32 1.0, %v2063_v15 }
0x14a3   :  { %2064 = vrcp.f32 %v1657_v34  ;;  %v1669_v62 = vand.u32 2147483648, %v1657_v34  ;;  %vm1663_vm3 = vweird.f32 %v1657_v34  ;;  %v1667_v47 = vand.u32 2147483647, %v1657_v34 }
0x14a5   :  { %v1670_v52 = vor.u32 1.1754944e-38, %v1669_v62  ;;  %vm1668_vm10 = vcmp.eq.f32.partialorder %v1667_v47, 8.507059e+37 }
0x14a9   :  { %v2065_v10 = vpop.eup %2064 }
0x14aa   :  { %v1659_v11 = vmul.f32 %v2065_v10, %v1657_v34  ;;  %vm1664_vm2 = vweird.f32 %v2065_v10 }
0x14ab   :  { %vm1665_vm9 = vmor %vm1663_vm3, %vm1664_vm2 }
0x14ac   :  { %v1660_v20 = vsub.f32 1.0, %v1659_v11 }
0x14ae   :  { %v1661_v22 = vmul.f32 %v2065_v10, %v1660_v20 }
0x14b0   :  { %v1662_v56 = vadd.f32 %v2065_v10, %v1661_v22 }
0x14b2   :  { %v1666_v29 = vsel %vm1665_vm9, %v2065_v10, %v1662_v56 }
0x14b3   :  { %v1671_v50 = vsel %vm1668_vm10, %v1670_v52, %v1666_v29 }
0x14b4   :  { %v1674_v42 = vmul.f32 %v1671_v50, %v2580_v54  ;;  %v1801_v54 = vld [vmem:[#allocation5 + $0x168] sm:$0xff] }
0x14b5   :  { %1821 = vmatpush.msrb.mxu3 %v1801_v54 }
0x14b7   :  { %1822 = vmatpush.msrb.mxu3 %v1800_v8 }
0x1511   :  { %v1677_v36 = vpop.permute.xlu0 %1676 }
0x1512   :  { %v1679_v44 = vmul.f32 %v1677_v36, %v1671_v50 }
0x1514   :  { %1681 = vrot.lane.b32.xlu1 %v1679_v44, %s2190_s24 }
0x1586   :  { %v1682_v43 = vpop.permute.xlu1 %1681 }
0x1587   :  { %v1684_v46 = vadd.f32 %v1682_v43, %v1674_v42 }
0x1589   :  { %2066 = vtanh.f32 %v1684_v46 }
0x158f   :  { %v2067_v45 = vpop.eup %2066 }
0x1590   :  { %1687 = vrot.lane.b32.xlu0 %v2067_v45, %s2189_s1 }
0x1602   :  { %v1688_v49 = vpop.permute.xlu0 %1687 }
0x1603   :  { %v1690_v57 = vmul.f32 %v1688_v49, %v1671_v50 }
0x1605   :  { %1720 = vrot.lane.b32.xlu1 %v1690_v57, %s2190_s24 }
0x1677   :  { %v1721_v21 = vpop.permute.xlu1 %1720 }
0x1678   :  { %1912 = vmatmul.msk.f32.vlgmr.msra.gmra.mxu0 %vm57_vm0, %v1721_v21  ;;  %1913 = vmatmul.msk.f32.vlgmr.msra.gmra.mxu1 %vm57_vm0, %v1721_v21 }
0x16f5   :  { %v1741_v12 = vpop.f32.mrf.mxu0  ;;  %v1773_v63 = vpop.f32.mrf.mxu1 }
0x16f6   :  { %v1742_v5 = vadd.f32 %v1741_v12, %v1716_v39  ;;  %v1794_v59 = vadd.f32 %v1793_v3, %v1773_v63 }
0x16f8   :  { %v1746_v60 = vadd.f32 %v1949_v58, %v1742_v5  ;;  %v1798_v61 = vadd.f32 %v1950_v32, %v1794_v59 }
0x16fa   :  { %2068 = vtanh.f32 %v1746_v60 }
0x16fb   :  { %2070 = vtanh.f32 %v1798_v61 }
0x1700   :  { %v2069_v28 = vpop.eup %2068 }
0x1701   :  { %v2071_v7 = vpop.eup %2070  ;;  %v1828_v9 = vrot.slane %v2069_v28, 1  ;;  %1830 = vst [vmem:[#allocation7 + $0x3] sm:$0x1] %v2069_v28 }
0x1702   :  { %1915 = vmatmul.msk.f32.vlgmr.msrb.gmra.mxu3 %vm543_vm12, %v2071_v7 }
0x1703   :  { %1831 = vst [vmem:[#allocation7 + $0x7] sm:$0x1] %v1828_v9 }
0x1704   :  { %1849 = dma.vmem_to_hbm [thread:$0]  %s1842_s26, 128, %s1844_s29, [#allocation4], %s2189_s1, %s2189_s1, %s2192_s30  }
0x1785   :  { %v1824_v16 = vpop.f32.mrf.mxu3 }
0x1786   :  { %v1825_v6 = vadd.f32 %v1951_v31, %v1824_v16 }
0x1788   :  { %v1833_v33 = vrot.slane %v1825_v6, 1  ;;  %1835 = vst [vmem:[#allocation8 + $0x3] sm:$0x1] %v1825_v6 }
0x178a   :  { %1836 = vst [vmem:[#allocation8 + $0x7] sm:$0x1] %v1833_v33 }
0x178b   :  { %1862 = dma.vmem_to_hbm [thread:$0]  %s1855_s5, 128, %s1857_s8, [#allocation9], %s2189_s1, %s2189_s1, %s2192_s30  }
0x178c   :  { %2179 = dma.done.wait [#allocation4], 128  }
0x178d   :  { %2180 = vsyncadd [#allocation4], 4294967168 }
0x178e   :  { %2181 = dma.done.wait [#allocation9], 128  }
0x178f   :  { %2182 = vsyncadd [#allocation9], 4294967168 }
0x1790   :  { %1871 = vsyncpa [#allocation3], 1 }
0x1791   :  { %1872 = vsyncpa [#allocation6], 1 }
0x1792   :  { %1873 = vsyncpa [#allocation4], 1 }
0x1793   :  { %1874 = vsyncpa [#allocation9], 1 }

</bundles_post_ra>
